<compile_context>
chip_gen: v7x
topology: tpu7x:2x2x1
jax: 0.10.0
libtpu: 0.0.40
codegen_flags: <defaults>
</compile_context>

<pallas_src>
import functools

import jax
import jax.numpy as jnp
from jax.experimental import pallas as pl


# ------------------------------ fused kernel --------------------------------
def _fused_kernel(rgb_ref, ir_ref, wred_ref, bnp_ref, wcls_ref,
                  feat_ref, bnfeat_ref, logit_ref, *,
                  n, num_strips, strip_rows, hw, pad_rows):
    """Fused strip/global pooling + JointSeg head (single invocation).

    rgb_ref / ir_ref : (N, C, H*W)          NCHW features, HW flattened
    wred_ref         : (nb, C, F)           per-branch 1x1-conv reduction
    bnp_ref          : (nb, 4, F)           rows = [s1, b1, s2, b2] (folded BN)
    wcls_ref         : (nb, F, ncls_pad)    classifier (class axis 128-padded)
    feat_ref         : (nb, pad_rows, F)
    bnfeat_ref       : (nb, pad_rows, F)
    logit_ref        : (nb, pad_rows, ncls_pad)
    Rows [0, 2N) of the outputs are real samples (rgb then ir); the rest is
    padding that the wrapper slices away.
    """
    nb = num_strips + 1
    two_n = 2 * n
    C = rgb_ref.shape[1]

    # Constant averaging matrix P : (nb, hw).
    #   row i < num_strips : 1/strip_rows over that strip's pixels, else 0
    #   row num_strips     : 1/hw everywhere (global average pool)
    # Matches PyTorch semantics even when H % num_strips != 0 (leftover rows
    # only contribute to the global pool).
    col = jax.lax.broadcasted_iota(jnp.int32, (nb, hw), 1)
    row = jax.lax.broadcasted_iota(jnp.int32, (nb, hw), 0)
    in_strip = (col >= row * strip_rows) & (col < (row + 1) * strip_rows)
    P = jnp.where(row == num_strips,
                  1.0 / hw,
                  jnp.where(in_strip, 1.0 / strip_rows, 0.0)).astype(jnp.float32)

    # Pooling as MXU matmul: pooled_s[i, c] = sum_p P[i, p] * x_s[c, p]
    dn = (((1,), (1,)), ((), ()))          # contract HW of both operands
    pooled_vals = []
    for s in range(two_n):
        x_s = rgb_ref[s] if s < n else ir_ref[s - n]          # (C, hw)
        pooled_vals.append(
            jax.lax.dot_general(P, x_s, dn,
                                preferred_element_type=jnp.float32))  # (nb, C)

    zero_pad = None
    if pad_rows > two_n:
        zero_pad = jnp.zeros((pad_rows - two_n, C), jnp.float32)

    # Per-branch head, fully unrolled; all weights already resident in VMEM.
    for i in range(nb):
        rows = [pooled_vals[s][i:i + 1, :] for s in range(two_n)]
        if zero_pad is not None:
            rows.append(zero_pad)
        lhs = jnp.concatenate(rows, axis=0)                    # (pad_rows, C)

        bnp_i = bnp_ref[i]                                     # (4, F)
        s1 = bnp_i[0:1, :]
        b1 = bnp_i[1:2, :]
        s2 = bnp_i[2:3, :]
        b2 = bnp_i[3:4, :]

        h = jnp.dot(lhs, wred_ref[i],
                    preferred_element_type=jnp.float32)        # (pad_rows, F)
        h = jnp.maximum(h * s1 + b1, 0.0)                      # BN + ReLU
        feat_ref[i] = h
        hb = h * s2 + b2                                       # BNNeck
        bnfeat_ref[i] = hb
        logit_ref[i] = jnp.dot(hb, wcls_ref[i],
                               preferred_element_type=jnp.float32)


def part_seg_forward(rgb, ir, wred, bnp, wcls_pad, *, num_strips, H, W,
                     pad_rows):
    """rgb/ir: (N, C, H*W) float32.  Returns (feat, bnfeat, logits) padded."""
    N, C, HW = rgb.shape
    nb = num_strips + 1
    F = wred.shape[-1]
    ncls_pad = wcls_pad.shape[-1]
    sh = H // num_strips

    kern = functools.partial(_fused_kernel, n=N, num_strips=num_strips,
                             strip_rows=sh * W, hw=HW, pad_rows=pad_rows)

    return pl.pallas_call(
        kern,
        out_shape=(
            jax.ShapeDtypeStruct((nb, pad_rows, F), jnp.float32),
            jax.ShapeDtypeStruct((nb, pad_rows, F), jnp.float32),
            jax.ShapeDtypeStruct((nb, pad_rows, ncls_pad), jnp.float32),
        ),
        grid=(1,),
        in_specs=[
            pl.BlockSpec((N, C, HW), lambda i: (0, 0, 0)),
            pl.BlockSpec((N, C, HW), lambda i: (0, 0, 0)),
            pl.BlockSpec((nb, C, F), lambda i: (0, 0, 0)),
            pl.BlockSpec((nb, 4, F), lambda i: (0, 0, 0)),
            pl.BlockSpec((nb, F, ncls_pad), lambda i: (0, 0, 0)),
        ],
        out_specs=(
            pl.BlockSpec((nb, pad_rows, F), lambda i: (0, 0, 0)),
            pl.BlockSpec((nb, pad_rows, F), lambda i: (0, 0, 0)),
            pl.BlockSpec((nb, pad_rows, ncls_pad), lambda i: (0, 0, 0)),
        ),
    )(rgb, ir, wred, bnp, wcls_pad)


# ------------------------------- module wrapper ------------------------------
class PartSegPallas:
    def __init__(self, in_channel, num_features, num_classes, num_strips=6,
                 key=jax.random.PRNGKey(42)):
        self.in_channel = in_channel
        self.num_features = num_features
        self.num_classes = num_classes
        self.num_strips = num_strips
        nb = num_strips + 1
        self.ncls_pad = ((num_classes + 127) // 128) * 128
        ks = jax.random.split(key, 10)
        eps = 1e-5

        self.wred = 0.02 * jax.random.normal(
            ks[0], (nb, in_channel, num_features), jnp.float32)
        self.wcls = 0.02 * jax.random.normal(
            ks[1], (nb, num_features, num_classes), jnp.float32)
        # Lane-dense classifier: pad class axis to a multiple of 128.
        self.wcls_pad = jnp.pad(
            self.wcls, ((0, 0), (0, 0), (0, self.ncls_pad - num_classes)))

        # reduction BN (running stats folded into scale/bias), eval mode
        g1 = 1.0 + 0.05 * jax.random.normal(ks[2], (nb, 1, num_features))
        be1 = 0.05 * jax.random.normal(ks[3], (nb, 1, num_features))
        m1 = 0.05 * jax.random.normal(ks[4], (nb, 1, num_features))
        v1 = 1.0 + 0.05 * jnp.abs(jax.random.normal(ks[5], (nb, 1, num_features)))
        self.s1 = (g1 / jnp.sqrt(v1 + eps)).astype(jnp.float32)
        self.b1 = (be1 - m1 * self.s1).astype(jnp.float32)

        # BNNeck, eval mode
        g2 = 1.0 + 0.05 * jax.random.normal(ks[6], (nb, 1, num_features))
        be2 = 0.05 * jax.random.normal(ks[7], (nb, 1, num_features))
        m2 = 0.05 * jax.random.normal(ks[8], (nb, 1, num_features))
        v2 = 1.0 + 0.05 * jnp.abs(jax.random.normal(ks[9], (nb, 1, num_features)))
        self.s2 = (g2 / jnp.sqrt(v2 + eps)).astype(jnp.float32)
        self.b2 = (be2 - m2 * self.s2).astype(jnp.float32)

        # Merged BN params: one (nb, 4, F) tensor -> one DMA.
        self.bnp = jnp.concatenate([self.s1, self.b1, self.s2, self.b2],
                                   axis=1).astype(jnp.float32)

    def __call__(self, rgb_feat, ir_feat, out_feature=False):
        # rgb_feat / ir_feat: NCHW (PyTorch convention), float32
        N, C, H, W = rgb_feat.shape
        two_n = 2 * N
        nb = self.num_strips + 1
        pad_rows = max(8, ((two_n + 7) // 8) * 8)

        # Free reshapes only -- no transpose / concat HBM passes in the wrapper.
        rgb = rgb_feat.reshape(N, C, H * W).astype(jnp.float32)
        ir = ir_feat.reshape(N, C, H * W).astype(jnp.float32)

        feat_a, bnfeat_a, logit_a = part_seg_forward(
            rgb, ir, self.wred, self.bnp, self.wcls_pad,
            num_strips=self.num_strips, H=H, W=W, pad_rows=pad_rows)

        feat_list = [feat_a[i, :two_n] for i in range(nb)]          # parts..., global
        logit_list = [logit_a[i, :two_n, :self.num_classes] for i in range(nb)]
        feat = bnfeat_a[nb - 1, :two_n]                             # global BNNeck feature

        if out_feature:
            return feat_list
        return feat, feat_list, logit_list


# ---------------------------------- main -------------------------------------
def _reference(model, rgb, ir):
    """Pure-JAX reference for a numerical sanity check."""
    rgbt = jnp.transpose(rgb, (0, 2, 3, 1))
    irt = jnp.transpose(ir, (0, 2, 3, 1))
    feats = jnp.concatenate([rgbt, irt], axis=0)              # (2N, H, W, C)
    B, H, W, C = feats.shape
    sh = H // model.num_strips
    rows = [feats[:, i * sh:(i + 1) * sh].mean(axis=(1, 2))
            for i in range(model.num_strips)]
    rows.append(feats.mean(axis=(1, 2)))
    pooled = jnp.stack(rows, axis=0)                          # (S+1, 2N, C)
    h = jnp.einsum('snc,scf->snf', pooled, model.wred)
    h = jnp.maximum(h * model.s1 + model.b1, 0.0)
    hb = h * model.s2 + model.b2
    logits = jnp.einsum('snf,sfk->snk', hb, model.wcls)
    return h, hb, logits


if __name__ == "__main__":
    N, C, H, W = 2, 128, 12, 16          # H divisible by num_strips=6
    num_features, num_classes, num_strips = 128, 16, 6

    key = jax.random.PRNGKey(0)
    k_rgb, k_ir = jax.random.split(key)
    rgb_feat = jax.random.normal(k_rgb, (N, C, H, W), jnp.float32)
    ir_feat = jax.random.normal(k_ir, (N, C, H, W), jnp.float32)

    model = PartSegPallas(in_channel=C, num_features=num_features,
                          num_classes=num_classes, num_strips=num_strips)

    feat, feat_list, logit_list = model(rgb_feat, ir_feat)
    jax.block_until_ready((feat, feat_list, logit_list))

    # sanity check against pure-JAX reference
    ref_h, ref_hb, ref_logits = _reference(model, rgb_feat, ir_feat)
    assert feat.shape == (2 * N, num_features)
    assert len(feat_list) == num_strips + 1
    assert len(logit_list) == num_strips + 1
    assert all(l.shape == (2 * N, num_classes) for l in logit_list)
    assert jnp.allclose(feat, ref_hb[-1], atol=1e-3, rtol=1e-3)
    assert all(jnp.allclose(feat_list[i], ref_h[i], atol=1e-3, rtol=1e-3)
               for i in range(num_strips + 1))
    assert all(jnp.allclose(logit_list[i], ref_logits[i], atol=1e-3, rtol=1e-3)
               for i in range(num_strips + 1))

    print("KERNEL_OK")
</pallas_src>

<mosaic_0001>
module attributes {stable_mosaic.version = 11 : i64} {
  func.func @_fused_kernel(%arg0: i32, %arg1: memref<2x128x192xf32, #tpu.memory_space<vmem>>, %arg2: memref<2x128x192xf32, #tpu.memory_space<vmem>>, %arg3: memref<7x128x128xf32, #tpu.memory_space<vmem>>, %arg4: memref<7x4x128xf32, #tpu.memory_space<vmem>>, %arg5: memref<7x128x128xf32, #tpu.memory_space<vmem>>, %arg6: memref<7x8x128xf32, #tpu.memory_space<vmem>>, %arg7: memref<7x8x128xf32, #tpu.memory_space<vmem>>, %arg8: memref<7x8x128xf32, #tpu.memory_space<vmem>>) attributes {dimension_semantics = [#tpu.dimension_semantics<arbitrary>], iteration_bounds = array<i64: 1>, scalar_prefetch = 0 : i64, scratch_operands = 0 : i64, tpu.core_type = #tpu.core_type<tc>, window_params = [{pipeline_mode = #tpu.pipeline_mode<synchronous>, transform_indices = @transform_0, window_bounds = array<i64: 2, 128, 192>}, {pipeline_mode = #tpu.pipeline_mode<synchronous>, transform_indices = @transform_1, window_bounds = array<i64: 2, 128, 192>}, {pipeline_mode = #tpu.pipeline_mode<synchronous>, transform_indices = @transform_2, window_bounds = array<i64: 7, 128, 128>}, {pipeline_mode = #tpu.pipeline_mode<synchronous>, transform_indices = @transform_3, window_bounds = array<i64: 7, 4, 128>}, {pipeline_mode = #tpu.pipeline_mode<synchronous>, transform_indices = @transform_4, window_bounds = array<i64: 7, 128, 128>}, {pipeline_mode = #tpu.pipeline_mode<synchronous>, transform_indices = @transform_5, window_bounds = array<i64: 7, 8, 128>}, {pipeline_mode = #tpu.pipeline_mode<synchronous>, transform_indices = @transform_6, window_bounds = array<i64: 7, 8, 128>}, {pipeline_mode = #tpu.pipeline_mode<synchronous>, transform_indices = @transform_7, window_bounds = array<i64: 7, 8, 128>}]} {
    %0 = tpu.iota {dimensions = array<i32: 1>} : vector<7x192xi32>
    %1 = tpu.iota {dimensions = array<i32: 0>} : vector<7x192xi32>
    %c32_i32 = arith.constant 32 : i32
    %2 = vector.broadcast %c32_i32 : i32 to vector<7x192xi32>
    %3 = arith.muli %1, %2 : vector<7x192xi32>
    %4 = arith.cmpi sge, %0, %3 : vector<7x192xi32>
    %c1_i32 = arith.constant 1 : i32
    %5 = vector.broadcast %c1_i32 : i32 to vector<7x192xi32>
    %6 = arith.addi %1, %5 : vector<7x192xi32>
    %c32_i32_0 = arith.constant 32 : i32
    %7 = vector.broadcast %c32_i32_0 : i32 to vector<7x192xi32>
    %8 = arith.muli %6, %7 : vector<7x192xi32>
    %9 = arith.cmpi slt, %0, %8 : vector<7x192xi32>
    %10 = arith.andi %4, %9 : vector<7x192xi1>
    %c6_i32 = arith.constant 6 : i32
    %11 = vector.broadcast %c6_i32 : i32 to vector<7x192xi32>
    %12 = arith.cmpi eq, %1, %11 : vector<7x192xi32>
    %cst = arith.constant 3.125000e-02 : f32
    %cst_1 = arith.constant 0.000000e+00 : f32
    %13 = vector.broadcast %cst : f32 to vector<7x192xf32>
    %14 = vector.broadcast %cst_1 : f32 to vector<7x192xf32>
    %15 = arith.select %10, %13, %14 : vector<7x192xi1>, vector<7x192xf32>
    %cst_2 = arith.constant 0.00520833349 : f32
    %16 = vector.broadcast %cst_2 : f32 to vector<7x192xf32>
    %17 = arith.select %12, %16, %15 : vector<7x192xi1>, vector<7x192xf32>
    %c0 = arith.constant 0 : index
    %c0_3 = arith.constant 0 : index
    %c0_4 = arith.constant 0 : index
    %18 = vector.load %arg1[%c0, %c0_3, %c0_4] : memref<2x128x192xf32, #tpu.memory_space<vmem>>, vector<1x128x192xf32>
    %19 = vector.shape_cast %18 : vector<1x128x192xf32> to vector<128x192xf32>
    %cst_5 = arith.constant dense<0.000000e+00> : vector<7x128xf32>
    %20 = tpu.matmul %17, %19, %cst_5 {dimension_numbers = #tpu.dot_dimension_numbers<[1], [1], [0], [0], [0, 0, 1, 0], [], []>} : vector<7x192xf32>, vector<128x192xf32>, vector<7x128xf32> -> vector<7x128xf32>
    %c1 = arith.constant 1 : index
    %c0_6 = arith.constant 0 : index
    %c0_7 = arith.constant 0 : index
    %21 = vector.load %arg1[%c1, %c0_6, %c0_7] : memref<2x128x192xf32, #tpu.memory_space<vmem>>, vector<1x128x192xf32>
    %22 = vector.shape_cast %21 : vector<1x128x192xf32> to vector<128x192xf32>
    %cst_8 = arith.constant dense<0.000000e+00> : vector<7x128xf32>
    %23 = tpu.matmul %17, %22, %cst_8 {dimension_numbers = #tpu.dot_dimension_numbers<[1], [1], [0], [0], [0, 0, 1, 0], [], []>} : vector<7x192xf32>, vector<128x192xf32>, vector<7x128xf32> -> vector<7x128xf32>
    %c0_9 = arith.constant 0 : index
    %c0_10 = arith.constant 0 : index
    %c0_11 = arith.constant 0 : index
    %24 = vector.load %arg2[%c0_9, %c0_10, %c0_11] : memref<2x128x192xf32, #tpu.memory_space<vmem>>, vector<1x128x192xf32>
    %25 = vector.shape_cast %24 : vector<1x128x192xf32> to vector<128x192xf32>
    %cst_12 = arith.constant dense<0.000000e+00> : vector<7x128xf32>
    %26 = tpu.matmul %17, %25, %cst_12 {dimension_numbers = #tpu.dot_dimension_numbers<[1], [1], [0], [0], [0, 0, 1, 0], [], []>} : vector<7x192xf32>, vector<128x192xf32>, vector<7x128xf32> -> vector<7x128xf32>
    %c1_13 = arith.constant 1 : index
    %c0_14 = arith.constant 0 : index
    %c0_15 = arith.constant 0 : index
    %27 = vector.load %arg2[%c1_13, %c0_14, %c0_15] : memref<2x128x192xf32, #tpu.memory_space<vmem>>, vector<1x128x192xf32>
    %28 = vector.shape_cast %27 : vector<1x128x192xf32> to vector<128x192xf32>
    %cst_16 = arith.constant dense<0.000000e+00> : vector<7x128xf32>
    %29 = tpu.matmul %17, %28, %cst_16 {dimension_numbers = #tpu.dot_dimension_numbers<[1], [1], [0], [0], [0, 0, 1, 0], [], []>} : vector<7x192xf32>, vector<128x192xf32>, vector<7x128xf32> -> vector<7x128xf32>
    %cst_17 = arith.constant 0.000000e+00 : f32
    %30 = vector.broadcast %cst_17 : f32 to vector<4x128xf32>
    %31 = vector.extract_strided_slice %20 {offsets = [0, 0], sizes = [1, 128], strides = [1, 1]} : vector<7x128xf32> to vector<1x128xf32>
    %32 = vector.extract_strided_slice %23 {offsets = [0, 0], sizes = [1, 128], strides = [1, 1]} : vector<7x128xf32> to vector<1x128xf32>
    %33 = vector.extract_strided_slice %26 {offsets = [0, 0], sizes = [1, 128], strides = [1, 1]} : vector<7x128xf32> to vector<1x128xf32>
    %34 = vector.extract_strided_slice %29 {offsets = [0, 0], sizes = [1, 128], strides = [1, 1]} : vector<7x128xf32> to vector<1x128xf32>
    %35 = tpu.concatenate %31, %32, %33, %34, %30 in 0 : vector<1x128xf32>, vector<1x128xf32>, vector<1x128xf32>, vector<1x128xf32>, vector<4x128xf32> -> vector<8x128xf32>
    %c0_18 = arith.constant 0 : index
    %c0_19 = arith.constant 0 : index
    %c0_20 = arith.constant 0 : index
    %36 = vector.load %arg4[%c0_18, %c0_19, %c0_20] : memref<7x4x128xf32, #tpu.memory_space<vmem>>, vector<1x4x128xf32>
    %37 = vector.shape_cast %36 : vector<1x4x128xf32> to vector<4x128xf32>
    %38 = vector.extract_strided_slice %37 {offsets = [0, 0], sizes = [1, 128], strides = [1, 1]} : vector<4x128xf32> to vector<1x128xf32>
    %39 = vector.extract_strided_slice %37 {offsets = [1, 0], sizes = [1, 128], strides = [1, 1]} : vector<4x128xf32> to vector<1x128xf32>
    %40 = vector.extract_strided_slice %37 {offsets = [2, 0], sizes = [1, 128], strides = [1, 1]} : vector<4x128xf32> to vector<1x128xf32>
    %41 = vector.extract_strided_slice %37 {offsets = [3, 0], sizes = [1, 128], strides = [1, 1]} : vector<4x128xf32> to vector<1x128xf32>
    %c0_21 = arith.constant 0 : index
    %c0_22 = arith.constant 0 : index
    %c0_23 = arith.constant 0 : index
    %42 = vector.load %arg3[%c0_21, %c0_22, %c0_23] : memref<7x128x128xf32, #tpu.memory_space<vmem>>, vector<1x128x128xf32>
    %43 = vector.shape_cast %42 : vector<1x128x128xf32> to vector<128x128xf32>
    %cst_24 = arith.constant dense<0.000000e+00> : vector<8x128xf32>
    %44 = tpu.matmul %35, %43, %cst_24 {dimension_numbers = #tpu.dot_dimension_numbers<[1], [0], [0], [1], [0, 0, 1, 1], [], []>} : vector<8x128xf32>, vector<128x128xf32>, vector<8x128xf32> -> vector<8x128xf32>
    %45 = vector.broadcast %38 : vector<1x128xf32> to vector<8x128xf32>
    %46 = arith.mulf %44, %45 : vector<8x128xf32>
    %47 = vector.broadcast %39 : vector<1x128xf32> to vector<8x128xf32>
    %48 = arith.addf %46, %47 : vector<8x128xf32>
    %cst_25 = arith.constant 0.000000e+00 : f32
    %49 = vector.broadcast %cst_25 : f32 to vector<8x128xf32>
    %50 = arith.maximumf %48, %49 : vector<8x128xf32>
    %c0_26 = arith.constant 0 : index
    %c0_27 = arith.constant 0 : index
    %c0_28 = arith.constant 0 : index
    %51 = vector.load %arg6[%c0_26, %c0_27, %c0_28] : memref<7x8x128xf32, #tpu.memory_space<vmem>>, vector<1x8x128xf32>
    %52 = vector.shape_cast %51 : vector<1x8x128xf32> to vector<8x128xf32>
    %53 = vector.shape_cast %50 : vector<8x128xf32> to vector<1x8x128xf32>
    tpu.vector_store %arg6[%c0_26, %c0_27, %c0_28], %53 {strides = array<i32>} : memref<7x8x128xf32, #tpu.memory_space<vmem>>, vector<1x8x128xf32>,
    %54 = vector.broadcast %40 : vector<1x128xf32> to vector<8x128xf32>
    %55 = arith.mulf %50, %54 : vector<8x128xf32>
    %56 = vector.broadcast %41 : vector<1x128xf32> to vector<8x128xf32>
    %57 = arith.addf %55, %56 : vector<8x128xf32>
    %c0_29 = arith.constant 0 : index
    %c0_30 = arith.constant 0 : index
    %c0_31 = arith.constant 0 : index
    %58 = vector.load %arg7[%c0_29, %c0_30, %c0_31] : memref<7x8x128xf32, #tpu.memory_space<vmem>>, vector<1x8x128xf32>
    %59 = vector.shape_cast %58 : vector<1x8x128xf32> to vector<8x128xf32>
    %60 = vector.shape_cast %57 : vector<8x128xf32> to vector<1x8x128xf32>
    tpu.vector_store %arg7[%c0_29, %c0_30, %c0_31], %60 {strides = array<i32>} : memref<7x8x128xf32, #tpu.memory_space<vmem>>, vector<1x8x128xf32>,
    %c0_32 = arith.constant 0 : index
    %c0_33 = arith.constant 0 : index
    %c0_34 = arith.constant 0 : index
    %61 = vector.load %arg5[%c0_32, %c0_33, %c0_34] : memref<7x128x128xf32, #tpu.memory_space<vmem>>, vector<1x128x128xf32>
    %62 = vector.shape_cast %61 : vector<1x128x128xf32> to vector<128x128xf32>
    %cst_35 = arith.constant dense<0.000000e+00> : vector<8x128xf32>
    %63 = tpu.matmul %57, %62, %cst_35 {dimension_numbers = #tpu.dot_dimension_numbers<[1], [0], [0], [1], [0, 0, 1, 1], [], []>} : vector<8x128xf32>, vector<128x128xf32>, vector<8x128xf32> -> vector<8x128xf32>
    %c0_36 = arith.constant 0 : index
    %c0_37 = arith.constant 0 : index
    %c0_38 = arith.constant 0 : index
    %64 = vector.load %arg8[%c0_36, %c0_37, %c0_38] : memref<7x8x128xf32, #tpu.memory_space<vmem>>, vector<1x8x128xf32>
    %65 = vector.shape_cast %64 : vector<1x8x128xf32> to vector<8x128xf32>
    %66 = vector.shape_cast %63 : vector<8x128xf32> to vector<1x8x128xf32>
    tpu.vector_store %arg8[%c0_36, %c0_37, %c0_38], %66 {strides = array<i32>} : memref<7x8x128xf32, #tpu.memory_space<vmem>>, vector<1x8x128xf32>,
    %67 = vector.extract_strided_slice %20 {offsets = [1, 0], sizes = [1, 128], strides = [1, 1]} : vector<7x128xf32> to vector<1x128xf32>
    %68 = vector.extract_strided_slice %23 {offsets = [1, 0], sizes = [1, 128], strides = [1, 1]} : vector<7x128xf32> to vector<1x128xf32>
    %69 = vector.extract_strided_slice %26 {offsets = [1, 0], sizes = [1, 128], strides = [1, 1]} : vector<7x128xf32> to vector<1x128xf32>
    %70 = vector.extract_strided_slice %29 {offsets = [1, 0], sizes = [1, 128], strides = [1, 1]} : vector<7x128xf32> to vector<1x128xf32>
    %71 = tpu.concatenate %67, %68, %69, %70, %30 in 0 : vector<1x128xf32>, vector<1x128xf32>, vector<1x128xf32>, vector<1x128xf32>, vector<4x128xf32> -> vector<8x128xf32>
    %c1_39 = arith.constant 1 : index
    %c0_40 = arith.constant 0 : index
    %c0_41 = arith.constant 0 : index
    %72 = vector.load %arg4[%c1_39, %c0_40, %c0_41] : memref<7x4x128xf32, #tpu.memory_space<vmem>>, vector<1x4x128xf32>
    %73 = vector.shape_cast %72 : vector<1x4x128xf32> to vector<4x128xf32>
    %74 = vector.extract_strided_slice %73 {offsets = [0, 0], sizes = [1, 128], strides = [1, 1]} : vector<4x128xf32> to vector<1x128xf32>
    %75 = vector.extract_strided_slice %73 {offsets = [1, 0], sizes = [1, 128], strides = [1, 1]} : vector<4x128xf32> to vector<1x128xf32>
    %76 = vector.extract_strided_slice %73 {offsets = [2, 0], sizes = [1, 128], strides = [1, 1]} : vector<4x128xf32> to vector<1x128xf32>
    %77 = vector.extract_strided_slice %73 {offsets = [3, 0], sizes = [1, 128], strides = [1, 1]} : vector<4x128xf32> to vector<1x128xf32>
    %c1_42 = arith.constant 1 : index
    %c0_43 = arith.constant 0 : index
    %c0_44 = arith.constant 0 : index
    %78 = vector.load %arg3[%c1_42, %c0_43, %c0_44] : memref<7x128x128xf32, #tpu.memory_space<vmem>>, vector<1x128x128xf32>
    %79 = vector.shape_cast %78 : vector<1x128x128xf32> to vector<128x128xf32>
    %cst_45 = arith.constant dense<0.000000e+00> : vector<8x128xf32>
    %80 = tpu.matmul %71, %79, %cst_45 {dimension_numbers = #tpu.dot_dimension_numbers<[1], [0], [0], [1], [0, 0, 1, 1], [], []>} : vector<8x128xf32>, vector<128x128xf32>, vector<8x128xf32> -> vector<8x128xf32>
    %81 = vector.broadcast %74 : vector<1x128xf32> to vector<8x128xf32>
    %82 = arith.mulf %80, %81 : vector<8x128xf32>
    %83 = vector.broadcast %75 : vector<1x128xf32> to vector<8x128xf32>
    %84 = arith.addf %82, %83 : vector<8x128xf32>
    %cst_46 = arith.constant 0.000000e+00 : f32
    %85 = vector.broadcast %cst_46 : f32 to vector<8x128xf32>
    %86 = arith.maximumf %84, %85 : vector<8x128xf32>
    %c1_47 = arith.constant 1 : index
    %c0_48 = arith.constant 0 : index
    %c0_49 = arith.constant 0 : index
    %87 = vector.load %arg6[%c1_47, %c0_48, %c0_49] : memref<7x8x128xf32, #tpu.memory_space<vmem>>, vector<1x8x128xf32>
    %88 = vector.shape_cast %87 : vector<1x8x128xf32> to vector<8x128xf32>
    %89 = vector.shape_cast %86 : vector<8x128xf32> to vector<1x8x128xf32>
    tpu.vector_store %arg6[%c1_47, %c0_48, %c0_49], %89 {strides = array<i32>} : memref<7x8x128xf32, #tpu.memory_space<vmem>>, vector<1x8x128xf32>,
    %90 = vector.broadcast %76 : vector<1x128xf32> to vector<8x128xf32>
    %91 = arith.mulf %86, %90 : vector<8x128xf32>
    %92 = vector.broadcast %77 : vector<1x128xf32> to vector<8x128xf32>
    %93 = arith.addf %91, %92 : vector<8x128xf32>
    %c1_50 = arith.constant 1 : index
    %c0_51 = arith.constant 0 : index
    %c0_52 = arith.constant 0 : index
    %94 = vector.load %arg7[%c1_50, %c0_51, %c0_52] : memref<7x8x128xf32, #tpu.memory_space<vmem>>, vector<1x8x128xf32>
    %95 = vector.shape_cast %94 : vector<1x8x128xf32> to vector<8x128xf32>
    %96 = vector.shape_cast %93 : vector<8x128xf32> to vector<1x8x128xf32>
    tpu.vector_store %arg7[%c1_50, %c0_51, %c0_52], %96 {strides = array<i32>} : memref<7x8x128xf32, #tpu.memory_space<vmem>>, vector<1x8x128xf32>,
    %c1_53 = arith.constant 1 : index
    %c0_54 = arith.constant 0 : index
    %c0_55 = arith.constant 0 : index
    %97 = vector.load %arg5[%c1_53, %c0_54, %c0_55] : memref<7x128x128xf32, #tpu.memory_space<vmem>>, vector<1x128x128xf32>
    %98 = vector.shape_cast %97 : vector<1x128x128xf32> to vector<128x128xf32>
    %cst_56 = arith.constant dense<0.000000e+00> : vector<8x128xf32>
    %99 = tpu.matmul %93, %98, %cst_56 {dimension_numbers = #tpu.dot_dimension_numbers<[1], [0], [0], [1], [0, 0, 1, 1], [], []>} : vector<8x128xf32>, vector<128x128xf32>, vector<8x128xf32> -> vector<8x128xf32>
    %c1_57 = arith.constant 1 : index
    %c0_58 = arith.constant 0 : index
    %c0_59 = arith.constant 0 : index
    %100 = vector.load %arg8[%c1_57, %c0_58, %c0_59] : memref<7x8x128xf32, #tpu.memory_space<vmem>>, vector<1x8x128xf32>
    %101 = vector.shape_cast %100 : vector<1x8x128xf32> to vector<8x128xf32>
    %102 = vector.shape_cast %99 : vector<8x128xf32> to vector<1x8x128xf32>
    tpu.vector_store %arg8[%c1_57, %c0_58, %c0_59], %102 {strides = array<i32>} : memref<7x8x128xf32, #tpu.memory_space<vmem>>, vector<1x8x128xf32>,
    %103 = vector.extract_strided_slice %20 {offsets = [2, 0], sizes = [1, 128], strides = [1, 1]} : vector<7x128xf32> to vector<1x128xf32>
    %104 = vector.extract_strided_slice %23 {offsets = [2, 0], sizes = [1, 128], strides = [1, 1]} : vector<7x128xf32> to vector<1x128xf32>
    %105 = vector.extract_strided_slice %26 {offsets = [2, 0], sizes = [1, 128], strides = [1, 1]} : vector<7x128xf32> to vector<1x128xf32>
    %106 = vector.extract_strided_slice %29 {offsets = [2, 0], sizes = [1, 128], strides = [1, 1]} : vector<7x128xf32> to vector<1x128xf32>
    %107 = tpu.concatenate %103, %104, %105, %106, %30 in 0 : vector<1x128xf32>, vector<1x128xf32>, vector<1x128xf32>, vector<1x128xf32>, vector<4x128xf32> -> vector<8x128xf32>
    %c2 = arith.constant 2 : index
    %c0_60 = arith.constant 0 : index
    %c0_61 = arith.constant 0 : index
    %108 = vector.load %arg4[%c2, %c0_60, %c0_61] : memref<7x4x128xf32, #tpu.memory_space<vmem>>, vector<1x4x128xf32>
    %109 = vector.shape_cast %108 : vector<1x4x128xf32> to vector<4x128xf32>
    %110 = vector.extract_strided_slice %109 {offsets = [0, 0], sizes = [1, 128], strides = [1, 1]} : vector<4x128xf32> to vector<1x128xf32>
    %111 = vector.extract_strided_slice %109 {offsets = [1, 0], sizes = [1, 128], strides = [1, 1]} : vector<4x128xf32> to vector<1x128xf32>
    %112 = vector.extract_strided_slice %109 {offsets = [2, 0], sizes = [1, 128], strides = [1, 1]} : vector<4x128xf32> to vector<1x128xf32>
    %113 = vector.extract_strided_slice %109 {offsets = [3, 0], sizes = [1, 128], strides = [1, 1]} : vector<4x128xf32> to vector<1x128xf32>
    %c2_62 = arith.constant 2 : index
    %c0_63 = arith.constant 0 : index
    %c0_64 = arith.constant 0 : index
    %114 = vector.load %arg3[%c2_62, %c0_63, %c0_64] : memref<7x128x128xf32, #tpu.memory_space<vmem>>, vector<1x128x128xf32>
    %115 = vector.shape_cast %114 : vector<1x128x128xf32> to vector<128x128xf32>
    %cst_65 = arith.constant dense<0.000000e+00> : vector<8x128xf32>
    %116 = tpu.matmul %107, %115, %cst_65 {dimension_numbers = #tpu.dot_dimension_numbers<[1], [0], [0], [1], [0, 0, 1, 1], [], []>} : vector<8x128xf32>, vector<128x128xf32>, vector<8x128xf32> -> vector<8x128xf32>
    %117 = vector.broadcast %110 : vector<1x128xf32> to vector<8x128xf32>
    %118 = arith.mulf %116, %117 : vector<8x128xf32>
    %119 = vector.broadcast %111 : vector<1x128xf32> to vector<8x128xf32>
    %120 = arith.addf %118, %119 : vector<8x128xf32>
    %cst_66 = arith.constant 0.000000e+00 : f32
    %121 = vector.broadcast %cst_66 : f32 to vector<8x128xf32>
    %122 = arith.maximumf %120, %121 : vector<8x128xf32>
    %c2_67 = arith.constant 2 : index
    %c0_68 = arith.constant 0 : index
    %c0_69 = arith.constant 0 : index
    %123 = vector.load %arg6[%c2_67, %c0_68, %c0_69] : memref<7x8x128xf32, #tpu.memory_space<vmem>>, vector<1x8x128xf32>
    %124 = vector.shape_cast %123 : vector<1x8x128xf32> to vector<8x128xf32>
    %125 = vector.shape_cast %122 : vector<8x128xf32> to vector<1x8x128xf32>
    tpu.vector_store %arg6[%c2_67, %c0_68, %c0_69], %125 {strides = array<i32>} : memref<7x8x128xf32, #tpu.memory_space<vmem>>, vector<1x8x128xf32>,
    %126 = vector.broadcast %112 : vector<1x128xf32> to vector<8x128xf32>
    %127 = arith.mulf %122, %126 : vector<8x128xf32>
    %128 = vector.broadcast %113 : vector<1x128xf32> to vector<8x128xf32>
    %129 = arith.addf %127, %128 : vector<8x128xf32>
    %c2_70 = arith.constant 2 : index
    %c0_71 = arith.constant 0 : index
    %c0_72 = arith.constant 0 : index
    %130 = vector.load %arg7[%c2_70, %c0_71, %c0_72] : memref<7x8x128xf32, #tpu.memory_space<vmem>>, vector<1x8x128xf32>
    %131 = vector.shape_cast %130 : vector<1x8x128xf32> to vector<8x128xf32>
    %132 = vector.shape_cast %129 : vector<8x128xf32> to vector<1x8x128xf32>
    tpu.vector_store %arg7[%c2_70, %c0_71, %c0_72], %132 {strides = array<i32>} : memref<7x8x128xf32, #tpu.memory_space<vmem>>, vector<1x8x128xf32>,
    %c2_73 = arith.constant 2 : index
    %c0_74 = arith.constant 0 : index
    %c0_75 = arith.constant 0 : index
    %133 = vector.load %arg5[%c2_73, %c0_74, %c0_75] : memref<7x128x128xf32, #tpu.memory_space<vmem>>, vector<1x128x128xf32>
    %134 = vector.shape_cast %133 : vector<1x128x128xf32> to vector<128x128xf32>
    %cst_76 = arith.constant dense<0.000000e+00> : vector<8x128xf32>
    %135 = tpu.matmul %129, %134, %cst_76 {dimension_numbers = #tpu.dot_dimension_numbers<[1], [0], [0], [1], [0, 0, 1, 1], [], []>} : vector<8x128xf32>, vector<128x128xf32>, vector<8x128xf32> -> vector<8x128xf32>
    %c2_77 = arith.constant 2 : index
    %c0_78 = arith.constant 0 : index
    %c0_79 = arith.constant 0 : index
    %136 = vector.load %arg8[%c2_77, %c0_78, %c0_79] : memref<7x8x128xf32, #tpu.memory_space<vmem>>, vector<1x8x128xf32>
    %137 = vector.shape_cast %136 : vector<1x8x128xf32> to vector<8x128xf32>
    %138 = vector.shape_cast %135 : vector<8x128xf32> to vector<1x8x128xf32>
    tpu.vector_store %arg8[%c2_77, %c0_78, %c0_79], %138 {strides = array<i32>} : memref<7x8x128xf32, #tpu.memory_space<vmem>>, vector<1x8x128xf32>,
    %139 = vector.extract_strided_slice %20 {offsets = [3, 0], sizes = [1, 128], strides = [1, 1]} : vector<7x128xf32> to vector<1x128xf32>
    %140 = vector.extract_strided_slice %23 {offsets = [3, 0], sizes = [1, 128], strides = [1, 1]} : vector<7x128xf32> to vector<1x128xf32>
    %141 = vector.extract_strided_slice %26 {offsets = [3, 0], sizes = [1, 128], strides = [1, 1]} : vector<7x128xf32> to vector<1x128xf32>
    %142 = vector.extract_strided_slice %29 {offsets = [3, 0], sizes = [1, 128], strides = [1, 1]} : vector<7x128xf32> to vector<1x128xf32>
    %143 = tpu.concatenate %139, %140, %141, %142, %30 in 0 : vector<1x128xf32>, vector<1x128xf32>, vector<1x128xf32>, vector<1x128xf32>, vector<4x128xf32> -> vector<8x128xf32>
    %c3 = arith.constant 3 : index
    %c0_80 = arith.constant 0 : index
    %c0_81 = arith.constant 0 : index
    %144 = vector.load %arg4[%c3, %c0_80, %c0_81] : memref<7x4x128xf32, #tpu.memory_space<vmem>>, vector<1x4x128xf32>
    %145 = vector.shape_cast %144 : vector<1x4x128xf32> to vector<4x128xf32>
    %146 = vector.extract_strided_slice %145 {offsets = [0, 0], sizes = [1, 128], strides = [1, 1]} : vector<4x128xf32> to vector<1x128xf32>
    %147 = vector.extract_strided_slice %145 {offsets = [1, 0], sizes = [1, 128], strides = [1, 1]} : vector<4x128xf32> to vector<1x128xf32>
    %148 = vector.extract_strided_slice %145 {offsets = [2, 0], sizes = [1, 128], strides = [1, 1]} : vector<4x128xf32> to vector<1x128xf32>
    %149 = vector.extract_strided_slice %145 {offsets = [3, 0], sizes = [1, 128], strides = [1, 1]} : vector<4x128xf32> to vector<1x128xf32>
    %c3_82 = arith.constant 3 : index
    %c0_83 = arith.constant 0 : index
    %c0_84 = arith.constant 0 : index
    %150 = vector.load %arg3[%c3_82, %c0_83, %c0_84] : memref<7x128x128xf32, #tpu.memory_space<vmem>>, vector<1x128x128xf32>
    %151 = vector.shape_cast %150 : vector<1x128x128xf32> to vector<128x128xf32>
    %cst_85 = arith.constant dense<0.000000e+00> : vector<8x128xf32>
    %152 = tpu.matmul %143, %151, %cst_85 {dimension_numbers = #tpu.dot_dimension_numbers<[1], [0], [0], [1], [0, 0, 1, 1], [], []>} : vector<8x128xf32>, vector<128x128xf32>, vector<8x128xf32> -> vector<8x128xf32>
    %153 = vector.broadcast %146 : vector<1x128xf32> to vector<8x128xf32>
    %154 = arith.mulf %152, %153 : vector<8x128xf32>
    %155 = vector.broadcast %147 : vector<1x128xf32> to vector<8x128xf32>
    %156 = arith.addf %154, %155 : vector<8x128xf32>
    %cst_86 = arith.constant 0.000000e+00 : f32
    %157 = vector.broadcast %cst_86 : f32 to vector<8x128xf32>
    %158 = arith.maximumf %156, %157 : vector<8x128xf32>
    %c3_87 = arith.constant 3 : index
    %c0_88 = arith.constant 0 : index
    %c0_89 = arith.constant 0 : index
    %159 = vector.load %arg6[%c3_87, %c0_88, %c0_89] : memref<7x8x128xf32, #tpu.memory_space<vmem>>, vector<1x8x128xf32>
    %160 = vector.shape_cast %159 : vector<1x8x128xf32> to vector<8x128xf32>
    %161 = vector.shape_cast %158 : vector<8x128xf32> to vector<1x8x128xf32>
    tpu.vector_store %arg6[%c3_87, %c0_88, %c0_89], %161 {strides = array<i32>} : memref<7x8x128xf32, #tpu.memory_space<vmem>>, vector<1x8x128xf32>,
    %162 = vector.broadcast %148 : vector<1x128xf32> to vector<8x128xf32>
    %163 = arith.mulf %158, %162 : vector<8x128xf32>
    %164 = vector.broadcast %149 : vector<1x128xf32> to vector<8x128xf32>
    %165 = arith.addf %163, %164 : vector<8x128xf32>
    %c3_90 = arith.constant 3 : index
    %c0_91 = arith.constant 0 : index
    %c0_92 = arith.constant 0 : index
    %166 = vector.load %arg7[%c3_90, %c0_91, %c0_92] : memref<7x8x128xf32, #tpu.memory_space<vmem>>, vector<1x8x128xf32>
    %167 = vector.shape_cast %166 : vector<1x8x128xf32> to vector<8x128xf32>
    %168 = vector.shape_cast %165 : vector<8x128xf32> to vector<1x8x128xf32>
    tpu.vector_store %arg7[%c3_90, %c0_91, %c0_92], %168 {strides = array<i32>} : memref<7x8x128xf32, #tpu.memory_space<vmem>>, vector<1x8x128xf32>,
    %c3_93 = arith.constant 3 : index
    %c0_94 = arith.constant 0 : index
    %c0_95 = arith.constant 0 : index
    %169 = vector.load %arg5[%c3_93, %c0_94, %c0_95] : memref<7x128x128xf32, #tpu.memory_space<vmem>>, vector<1x128x128xf32>
    %170 = vector.shape_cast %169 : vector<1x128x128xf32> to vector<128x128xf32>
    %cst_96 = arith.constant dense<0.000000e+00> : vector<8x128xf32>
    %171 = tpu.matmul %165, %170, %cst_96 {dimension_numbers = #tpu.dot_dimension_numbers<[1], [0], [0], [1], [0, 0, 1, 1], [], []>} : vector<8x128xf32>, vector<128x128xf32>, vector<8x128xf32> -> vector<8x128xf32>
    %c3_97 = arith.constant 3 : index
    %c0_98 = arith.constant 0 : index
    %c0_99 = arith.constant 0 : index
    %172 = vector.load %arg8[%c3_97, %c0_98, %c0_99] : memref<7x8x128xf32, #tpu.memory_space<vmem>>, vector<1x8x128xf32>
    %173 = vector.shape_cast %172 : vector<1x8x128xf32> to vector<8x128xf32>
    %174 = vector.shape_cast %171 : vector<8x128xf32> to vector<1x8x128xf32>
    tpu.vector_store %arg8[%c3_97, %c0_98, %c0_99], %174 {strides = array<i32>} : memref<7x8x128xf32, #tpu.memory_space<vmem>>, vector<1x8x128xf32>,
    %175 = vector.extract_strided_slice %20 {offsets = [4, 0], sizes = [1, 128], strides = [1, 1]} : vector<7x128xf32> to vector<1x128xf32>
    %176 = vector.extract_strided_slice %23 {offsets = [4, 0], sizes = [1, 128], strides = [1, 1]} : vector<7x128xf32> to vector<1x128xf32>
    %177 = vector.extract_strided_slice %26 {offsets = [4, 0], sizes = [1, 128], strides = [1, 1]} : vector<7x128xf32> to vector<1x128xf32>
    %178 = vector.extract_strided_slice %29 {offsets = [4, 0], sizes = [1, 128], strides = [1, 1]} : vector<7x128xf32> to vector<1x128xf32>
    %179 = tpu.concatenate %175, %176, %177, %178, %30 in 0 : vector<1x128xf32>, vector<1x128xf32>, vector<1x128xf32>, vector<1x128xf32>, vector<4x128xf32> -> vector<8x128xf32>
    %c4 = arith.constant 4 : index
    %c0_100 = arith.constant 0 : index
    %c0_101 = arith.constant 0 : index
    %180 = vector.load %arg4[%c4, %c0_100, %c0_101] : memref<7x4x128xf32, #tpu.memory_space<vmem>>, vector<1x4x128xf32>
    %181 = vector.shape_cast %180 : vector<1x4x128xf32> to vector<4x128xf32>
    %182 = vector.extract_strided_slice %181 {offsets = [0, 0], sizes = [1, 128], strides = [1, 1]} : vector<4x128xf32> to vector<1x128xf32>
    %183 = vector.extract_strided_slice %181 {offsets = [1, 0], sizes = [1, 128], strides = [1, 1]} : vector<4x128xf32> to vector<1x128xf32>
    %184 = vector.extract_strided_slice %181 {offsets = [2, 0], sizes = [1, 128], strides = [1, 1]} : vector<4x128xf32> to vector<1x128xf32>
    %185 = vector.extract_strided_slice %181 {offsets = [3, 0], sizes = [1, 128], strides = [1, 1]} : vector<4x128xf32> to vector<1x128xf32>
    %c4_102 = arith.constant 4 : index
    %c0_103 = arith.constant 0 : index
    %c0_104 = arith.constant 0 : index
    %186 = vector.load %arg3[%c4_102, %c0_103, %c0_104] : memref<7x128x128xf32, #tpu.memory_space<vmem>>, vector<1x128x128xf32>
    %187 = vector.shape_cast %186 : vector<1x128x128xf32> to vector<128x128xf32>
    %cst_105 = arith.constant dense<0.000000e+00> : vector<8x128xf32>
    %188 = tpu.matmul %179, %187, %cst_105 {dimension_numbers = #tpu.dot_dimension_numbers<[1], [0], [0], [1], [0, 0, 1, 1], [], []>} : vector<8x128xf32>, vector<128x128xf32>, vector<8x128xf32> -> vector<8x128xf32>
    %189 = vector.broadcast %182 : vector<1x128xf32> to vector<8x128xf32>
    %190 = arith.mulf %188, %189 : vector<8x128xf32>
    %191 = vector.broadcast %183 : vector<1x128xf32> to vector<8x128xf32>
    %192 = arith.addf %190, %191 : vector<8x128xf32>
    %cst_106 = arith.constant 0.000000e+00 : f32
    %193 = vector.broadcast %cst_106 : f32 to vector<8x128xf32>
    %194 = arith.maximumf %192, %193 : vector<8x128xf32>
    %c4_107 = arith.constant 4 : index
    %c0_108 = arith.constant 0 : index
    %c0_109 = arith.constant 0 : index
    %195 = vector.load %arg6[%c4_107, %c0_108, %c0_109] : memref<7x8x128xf32, #tpu.memory_space<vmem>>, vector<1x8x128xf32>
    %196 = vector.shape_cast %195 : vector<1x8x128xf32> to vector<8x128xf32>
    %197 = vector.shape_cast %194 : vector<8x128xf32> to vector<1x8x128xf32>
    tpu.vector_store %arg6[%c4_107, %c0_108, %c0_109], %197 {strides = array<i32>} : memref<7x8x128xf32, #tpu.memory_space<vmem>>, vector<1x8x128xf32>,
    %198 = vector.broadcast %184 : vector<1x128xf32> to vector<8x128xf32>
    %199 = arith.mulf %194, %198 : vector<8x128xf32>
    %200 = vector.broadcast %185 : vector<1x128xf32> to vector<8x128xf32>
    %201 = arith.addf %199, %200 : vector<8x128xf32>
    %c4_110 = arith.constant 4 : index
    %c0_111 = arith.constant 0 : index
    %c0_112 = arith.constant 0 : index
    %202 = vector.load %arg7[%c4_110, %c0_111, %c0_112] : memref<7x8x128xf32, #tpu.memory_space<vmem>>, vector<1x8x128xf32>
    %203 = vector.shape_cast %202 : vector<1x8x128xf32> to vector<8x128xf32>
    %204 = vector.shape_cast %201 : vector<8x128xf32> to vector<1x8x128xf32>
    tpu.vector_store %arg7[%c4_110, %c0_111, %c0_112], %204 {strides = array<i32>} : memref<7x8x128xf32, #tpu.memory_space<vmem>>, vector<1x8x128xf32>,
    %c4_113 = arith.constant 4 : index
    %c0_114 = arith.constant 0 : index
    %c0_115 = arith.constant 0 : index
    %205 = vector.load %arg5[%c4_113, %c0_114, %c0_115] : memref<7x128x128xf32, #tpu.memory_space<vmem>>, vector<1x128x128xf32>
    %206 = vector.shape_cast %205 : vector<1x128x128xf32> to vector<128x128xf32>
    %cst_116 = arith.constant dense<0.000000e+00> : vector<8x128xf32>
    %207 = tpu.matmul %201, %206, %cst_116 {dimension_numbers = #tpu.dot_dimension_numbers<[1], [0], [0], [1], [0, 0, 1, 1], [], []>} : vector<8x128xf32>, vector<128x128xf32>, vector<8x128xf32> -> vector<8x128xf32>
    %c4_117 = arith.constant 4 : index
    %c0_118 = arith.constant 0 : index
    %c0_119 = arith.constant 0 : index
    %208 = vector.load %arg8[%c4_117, %c0_118, %c0_119] : memref<7x8x128xf32, #tpu.memory_space<vmem>>, vector<1x8x128xf32>
    %209 = vector.shape_cast %208 : vector<1x8x128xf32> to vector<8x128xf32>
    %210 = vector.shape_cast %207 : vector<8x128xf32> to vector<1x8x128xf32>
    tpu.vector_store %arg8[%c4_117, %c0_118, %c0_119], %210 {strides = array<i32>} : memref<7x8x128xf32, #tpu.memory_space<vmem>>, vector<1x8x128xf32>,
    %211 = vector.extract_strided_slice %20 {offsets = [5, 0], sizes = [1, 128], strides = [1, 1]} : vector<7x128xf32> to vector<1x128xf32>
    %212 = vector.extract_strided_slice %23 {offsets = [5, 0], sizes = [1, 128], strides = [1, 1]} : vector<7x128xf32> to vector<1x128xf32>
    %213 = vector.extract_strided_slice %26 {offsets = [5, 0], sizes = [1, 128], strides = [1, 1]} : vector<7x128xf32> to vector<1x128xf32>
    %214 = vector.extract_strided_slice %29 {offsets = [5, 0], sizes = [1, 128], strides = [1, 1]} : vector<7x128xf32> to vector<1x128xf32>
    %215 = tpu.concatenate %211, %212, %213, %214, %30 in 0 : vector<1x128xf32>, vector<1x128xf32>, vector<1x128xf32>, vector<1x128xf32>, vector<4x128xf32> -> vector<8x128xf32>
    %c5 = arith.constant 5 : index
    %c0_120 = arith.constant 0 : index
    %c0_121 = arith.constant 0 : index
    %216 = vector.load %arg4[%c5, %c0_120, %c0_121] : memref<7x4x128xf32, #tpu.memory_space<vmem>>, vector<1x4x128xf32>
    %217 = vector.shape_cast %216 : vector<1x4x128xf32> to vector<4x128xf32>
    %218 = vector.extract_strided_slice %217 {offsets = [0, 0], sizes = [1, 128], strides = [1, 1]} : vector<4x128xf32> to vector<1x128xf32>
    %219 = vector.extract_strided_slice %217 {offsets = [1, 0], sizes = [1, 128], strides = [1, 1]} : vector<4x128xf32> to vector<1x128xf32>
    %220 = vector.extract_strided_slice %217 {offsets = [2, 0], sizes = [1, 128], strides = [1, 1]} : vector<4x128xf32> to vector<1x128xf32>
    %221 = vector.extract_strided_slice %217 {offsets = [3, 0], sizes = [1, 128], strides = [1, 1]} : vector<4x128xf32> to vector<1x128xf32>
    %c5_122 = arith.constant 5 : index
    %c0_123 = arith.constant 0 : index
    %c0_124 = arith.constant 0 : index
    %222 = vector.load %arg3[%c5_122, %c0_123, %c0_124] : memref<7x128x128xf32, #tpu.memory_space<vmem>>, vector<1x128x128xf32>
    %223 = vector.shape_cast %222 : vector<1x128x128xf32> to vector<128x128xf32>
    %cst_125 = arith.constant dense<0.000000e+00> : vector<8x128xf32>
    %224 = tpu.matmul %215, %223, %cst_125 {dimension_numbers = #tpu.dot_dimension_numbers<[1], [0], [0], [1], [0, 0, 1, 1], [], []>} : vector<8x128xf32>, vector<128x128xf32>, vector<8x128xf32> -> vector<8x128xf32>
    %225 = vector.broadcast %218 : vector<1x128xf32> to vector<8x128xf32>
    %226 = arith.mulf %224, %225 : vector<8x128xf32>
    %227 = vector.broadcast %219 : vector<1x128xf32> to vector<8x128xf32>
    %228 = arith.addf %226, %227 : vector<8x128xf32>
    %cst_126 = arith.constant 0.000000e+00 : f32
    %229 = vector.broadcast %cst_126 : f32 to vector<8x128xf32>
    %230 = arith.maximumf %228, %229 : vector<8x128xf32>
    %c5_127 = arith.constant 5 : index
    %c0_128 = arith.constant 0 : index
    %c0_129 = arith.constant 0 : index
    %231 = vector.load %arg6[%c5_127, %c0_128, %c0_129] : memref<7x8x128xf32, #tpu.memory_space<vmem>>, vector<1x8x128xf32>
    %232 = vector.shape_cast %231 : vector<1x8x128xf32> to vector<8x128xf32>
    %233 = vector.shape_cast %230 : vector<8x128xf32> to vector<1x8x128xf32>
    tpu.vector_store %arg6[%c5_127, %c0_128, %c0_129], %233 {strides = array<i32>} : memref<7x8x128xf32, #tpu.memory_space<vmem>>, vector<1x8x128xf32>,
    %234 = vector.broadcast %220 : vector<1x128xf32> to vector<8x128xf32>
    %235 = arith.mulf %230, %234 : vector<8x128xf32>
    %236 = vector.broadcast %221 : vector<1x128xf32> to vector<8x128xf32>
    %237 = arith.addf %235, %236 : vector<8x128xf32>
    %c5_130 = arith.constant 5 : index
    %c0_131 = arith.constant 0 : index
    %c0_132 = arith.constant 0 : index
    %238 = vector.load %arg7[%c5_130, %c0_131, %c0_132] : memref<7x8x128xf32, #tpu.memory_space<vmem>>, vector<1x8x128xf32>
    %239 = vector.shape_cast %238 : vector<1x8x128xf32> to vector<8x128xf32>
    %240 = vector.shape_cast %237 : vector<8x128xf32> to vector<1x8x128xf32>
    tpu.vector_store %arg7[%c5_130, %c0_131, %c0_132], %240 {strides = array<i32>} : memref<7x8x128xf32, #tpu.memory_space<vmem>>, vector<1x8x128xf32>,
    %c5_133 = arith.constant 5 : index
    %c0_134 = arith.constant 0 : index
    %c0_135 = arith.constant 0 : index
    %241 = vector.load %arg5[%c5_133, %c0_134, %c0_135] : memref<7x128x128xf32, #tpu.memory_space<vmem>>, vector<1x128x128xf32>
    %242 = vector.shape_cast %241 : vector<1x128x128xf32> to vector<128x128xf32>
    %cst_136 = arith.constant dense<0.000000e+00> : vector<8x128xf32>
    %243 = tpu.matmul %237, %242, %cst_136 {dimension_numbers = #tpu.dot_dimension_numbers<[1], [0], [0], [1], [0, 0, 1, 1], [], []>} : vector<8x128xf32>, vector<128x128xf32>, vector<8x128xf32> -> vector<8x128xf32>
    %c5_137 = arith.constant 5 : index
    %c0_138 = arith.constant 0 : index
    %c0_139 = arith.constant 0 : index
    %244 = vector.load %arg8[%c5_137, %c0_138, %c0_139] : memref<7x8x128xf32, #tpu.memory_space<vmem>>, vector<1x8x128xf32>
    %245 = vector.shape_cast %244 : vector<1x8x128xf32> to vector<8x128xf32>
    %246 = vector.shape_cast %243 : vector<8x128xf32> to vector<1x8x128xf32>
    tpu.vector_store %arg8[%c5_137, %c0_138, %c0_139], %246 {strides = array<i32>} : memref<7x8x128xf32, #tpu.memory_space<vmem>>, vector<1x8x128xf32>,
    %247 = vector.extract_strided_slice %20 {offsets = [6, 0], sizes = [1, 128], strides = [1, 1]} : vector<7x128xf32> to vector<1x128xf32>
    %248 = vector.extract_strided_slice %23 {offsets = [6, 0], sizes = [1, 128], strides = [1, 1]} : vector<7x128xf32> to vector<1x128xf32>
    %249 = vector.extract_strided_slice %26 {offsets = [6, 0], sizes = [1, 128], strides = [1, 1]} : vector<7x128xf32> to vector<1x128xf32>
    %250 = vector.extract_strided_slice %29 {offsets = [6, 0], sizes = [1, 128], strides = [1, 1]} : vector<7x128xf32> to vector<1x128xf32>
    %251 = tpu.concatenate %247, %248, %249, %250, %30 in 0 : vector<1x128xf32>, vector<1x128xf32>, vector<1x128xf32>, vector<1x128xf32>, vector<4x128xf32> -> vector<8x128xf32>
    %c6 = arith.constant 6 : index
    %c0_140 = arith.constant 0 : index
    %c0_141 = arith.constant 0 : index
    %252 = vector.load %arg4[%c6, %c0_140, %c0_141] : memref<7x4x128xf32, #tpu.memory_space<vmem>>, vector<1x4x128xf32>
    %253 = vector.shape_cast %252 : vector<1x4x128xf32> to vector<4x128xf32>
    %254 = vector.extract_strided_slice %253 {offsets = [0, 0], sizes = [1, 128], strides = [1, 1]} : vector<4x128xf32> to vector<1x128xf32>
    %255 = vector.extract_strided_slice %253 {offsets = [1, 0], sizes = [1, 128], strides = [1, 1]} : vector<4x128xf32> to vector<1x128xf32>
    %256 = vector.extract_strided_slice %253 {offsets = [2, 0], sizes = [1, 128], strides = [1, 1]} : vector<4x128xf32> to vector<1x128xf32>
    %257 = vector.extract_strided_slice %253 {offsets = [3, 0], sizes = [1, 128], strides = [1, 1]} : vector<4x128xf32> to vector<1x128xf32>
    %c6_142 = arith.constant 6 : index
    %c0_143 = arith.constant 0 : index
    %c0_144 = arith.constant 0 : index
    %258 = vector.load %arg3[%c6_142, %c0_143, %c0_144] : memref<7x128x128xf32, #tpu.memory_space<vmem>>, vector<1x128x128xf32>
    %259 = vector.shape_cast %258 : vector<1x128x128xf32> to vector<128x128xf32>
    %cst_145 = arith.constant dense<0.000000e+00> : vector<8x128xf32>
    %260 = tpu.matmul %251, %259, %cst_145 {dimension_numbers = #tpu.dot_dimension_numbers<[1], [0], [0], [1], [0, 0, 1, 1], [], []>} : vector<8x128xf32>, vector<128x128xf32>, vector<8x128xf32> -> vector<8x128xf32>
    %261 = vector.broadcast %254 : vector<1x128xf32> to vector<8x128xf32>
    %262 = arith.mulf %260, %261 : vector<8x128xf32>
    %263 = vector.broadcast %255 : vector<1x128xf32> to vector<8x128xf32>
    %264 = arith.addf %262, %263 : vector<8x128xf32>
    %cst_146 = arith.constant 0.000000e+00 : f32
    %265 = vector.broadcast %cst_146 : f32 to vector<8x128xf32>
    %266 = arith.maximumf %264, %265 : vector<8x128xf32>
    %c6_147 = arith.constant 6 : index
    %c0_148 = arith.constant 0 : index
    %c0_149 = arith.constant 0 : index
    %267 = vector.load %arg6[%c6_147, %c0_148, %c0_149] : memref<7x8x128xf32, #tpu.memory_space<vmem>>, vector<1x8x128xf32>
    %268 = vector.shape_cast %267 : vector<1x8x128xf32> to vector<8x128xf32>
    %269 = vector.shape_cast %266 : vector<8x128xf32> to vector<1x8x128xf32>
    tpu.vector_store %arg6[%c6_147, %c0_148, %c0_149], %269 {strides = array<i32>} : memref<7x8x128xf32, #tpu.memory_space<vmem>>, vector<1x8x128xf32>,
    %270 = vector.broadcast %256 : vector<1x128xf32> to vector<8x128xf32>
    %271 = arith.mulf %266, %270 : vector<8x128xf32>
    %272 = vector.broadcast %257 : vector<1x128xf32> to vector<8x128xf32>
    %273 = arith.addf %271, %272 : vector<8x128xf32>
    %c6_150 = arith.constant 6 : index
    %c0_151 = arith.constant 0 : index
    %c0_152 = arith.constant 0 : index
    %274 = vector.load %arg7[%c6_150, %c0_151, %c0_152] : memref<7x8x128xf32, #tpu.memory_space<vmem>>, vector<1x8x128xf32>
    %275 = vector.shape_cast %274 : vector<1x8x128xf32> to vector<8x128xf32>
    %276 = vector.shape_cast %273 : vector<8x128xf32> to vector<1x8x128xf32>
    tpu.vector_store %arg7[%c6_150, %c0_151, %c0_152], %276 {strides = array<i32>} : memref<7x8x128xf32, #tpu.memory_space<vmem>>, vector<1x8x128xf32>,
    %c6_153 = arith.constant 6 : index
    %c0_154 = arith.constant 0 : index
    %c0_155 = arith.constant 0 : index
    %277 = vector.load %arg5[%c6_153, %c0_154, %c0_155] : memref<7x128x128xf32, #tpu.memory_space<vmem>>, vector<1x128x128xf32>
    %278 = vector.shape_cast %277 : vector<1x128x128xf32> to vector<128x128xf32>
    %cst_156 = arith.constant dense<0.000000e+00> : vector<8x128xf32>
    %279 = tpu.matmul %273, %278, %cst_156 {dimension_numbers = #tpu.dot_dimension_numbers<[1], [0], [0], [1], [0, 0, 1, 1], [], []>} : vector<8x128xf32>, vector<128x128xf32>, vector<8x128xf32> -> vector<8x128xf32>
    %c6_157 = arith.constant 6 : index
    %c0_158 = arith.constant 0 : index
    %c0_159 = arith.constant 0 : index
    %280 = vector.load %arg8[%c6_157, %c0_158, %c0_159] : memref<7x8x128xf32, #tpu.memory_space<vmem>>, vector<1x8x128xf32>
    %281 = vector.shape_cast %280 : vector<1x8x128xf32> to vector<8x128xf32>
    %282 = vector.shape_cast %279 : vector<8x128xf32> to vector<1x8x128xf32>
    tpu.vector_store %arg8[%c6_157, %c0_158, %c0_159], %282 {strides = array<i32>} : memref<7x8x128xf32, #tpu.memory_space<vmem>>, vector<1x8x128xf32>,
    return
  }
  func.func @transform_0(%arg0: i32) -> (i32, i32, i32) {
    %c0_i32 = arith.constant 0 : i32
    %c0_i32_0 = arith.constant 0 : i32
    %c0_i32_1 = arith.constant 0 : i32
    %c0_i32_2 = arith.constant 0 : i32
    return %c0_i32, %c0_i32_0, %c0_i32_1 : i32, i32, i32
  }
  func.func @transform_1(%arg0: i32) -> (i32, i32, i32) {
    %c0_i32 = arith.constant 0 : i32
    %c0_i32_0 = arith.constant 0 : i32
    %c0_i32_1 = arith.constant 0 : i32
    %c0_i32_2 = arith.constant 0 : i32
    return %c0_i32, %c0_i32_0, %c0_i32_1 : i32, i32, i32
  }
  func.func @transform_2(%arg0: i32) -> (i32, i32, i32) {
    %c0_i32 = arith.constant 0 : i32
    %c0_i32_0 = arith.constant 0 : i32
    %c0_i32_1 = arith.constant 0 : i32
    %c0_i32_2 = arith.constant 0 : i32
    return %c0_i32, %c0_i32_0, %c0_i32_1 : i32, i32, i32
  }
  func.func @transform_3(%arg0: i32) -> (i32, i32, i32) {
    %c0_i32 = arith.constant 0 : i32
    %c0_i32_0 = arith.constant 0 : i32
    %c0_i32_1 = arith.constant 0 : i32
    %c0_i32_2 = arith.constant 0 : i32
    return %c0_i32, %c0_i32_0, %c0_i32_1 : i32, i32, i32
  }
  func.func @transform_4(%arg0: i32) -> (i32, i32, i32) {
    %c0_i32 = arith.constant 0 : i32
    %c0_i32_0 = arith.constant 0 : i32
    %c0_i32_1 = arith.constant 0 : i32
    %c0_i32_2 = arith.constant 0 : i32
    return %c0_i32, %c0_i32_0, %c0_i32_1 : i32, i32, i32
  }
  func.func @transform_5(%arg0: i32) -> (i32, i32, i32) {
    %c0_i32 = arith.constant 0 : i32
    %c0_i32_0 = arith.constant 0 : i32
    %c0_i32_1 = arith.constant 0 : i32
    %c0_i32_2 = arith.constant 0 : i32
    return %c0_i32, %c0_i32_0, %c0_i32_1 : i32, i32, i32
  }
  func.func @transform_6(%arg0: i32) -> (i32, i32, i32) {
    %c0_i32 = arith.constant 0 : i32
    %c0_i32_0 = arith.constant 0 : i32
    %c0_i32_1 = arith.constant 0 : i32
    %c0_i32_2 = arith.constant 0 : i32
    return %c0_i32, %c0_i32_0, %c0_i32_1 : i32, i32, i32
  }
  func.func @transform_7(%arg0: i32) -> (i32, i32, i32) {
    %c0_i32 = arith.constant 0 : i32
    %c0_i32_0 = arith.constant 0 : i32
    %c0_i32_1 = arith.constant 0 : i32
    %c0_i32_2 = arith.constant 0 : i32
    return %c0_i32, %c0_i32_0, %c0_i32_1 : i32, i32, i32
  }
}

</mosaic_0001>

<bundles_post_ra>
// kernel: tpu_custom_call.1
= control target key start
LH: loop header
LB: loop body
LE: loop exit
PB: predicated region body
PF: predicated region fallthrough
CT: control target
= control target key end

     0   :  { %13 = vsyncpa [#allocation3], 0  ;;  %s5384_s0 = inlined_call_operand.vmem [shape: f32[2,128,192], index: 0, kind: input, shape index: {}]   ;;  %s5385_s1 = inlined_call_operand.vmem [shape: f32[2,128,192], index: 1, kind: input, shape index: {}]   ;;  %s5386_s2 = inlined_call_operand.vmem [shape: f32[7,128,128], index: 2, kind: input, shape index: {}]   ;;  %s5387_s3 = inlined_call_operand.hbm [shape: f32[7,4,128], index: 3, kind: input, shape index: {}]   ;;  %s5388_s4 = inlined_call_operand.vmem [shape: f32[7,128,128], index: 4, kind: input, shape index: {}]   ;;  %s5389_s5 = inlined_call_operand.hbm [shape: f32[7,8,128], index: 5, kind: output, shape index: {0}]   ;;  %s5390_s6 = inlined_call_operand.hbm [shape: f32[7,8,128], index: 6, kind: output, shape index: {1}]   ;;  %s5391_s7 = inlined_call_operand.hbm [shape: f32[7,8,128], index: 7, kind: output, shape index: {2}]  }
   0x1   :  { %14 = vsyncpa [#allocation4], 0 }
   0x2   :  { %15 = vsyncpa [#allocation7], 0  ;;  %s3871_s24 = smov [#allocation2]   ;;  %s3777_s28 = scalar_lea.hbm %s5387_s3, 448 }
   0x3   :  { %s27_s25 = sshll.u32 %s3871_s24, 4  ;;  %p3778_p0 = scmp.ne.s32.totalorder %s5387_s3, %s3777_s28  ;;  %s28_s25 = int_to_ptr.vmem [resolvable:$true] %s27_s25 }
   0x4   :  { %p3781_p1 = scmp.lt.u32.totalorder %s3777_s28, %s5387_s3 }
   0x6   :  { %p3783_p2 = pnand %p3781_p1, %p3778_p0 }
   0x8   :  { %3786 = shalt.err (!%p3783_p2)
}
   0x9   :  { %s3787_s10 = scalar_lea.vmem %s28_s25, 448  ;;  %p3792_p4 = scmp.lt.s32.totalorder %s28_s25, %s28_s25 }
   0xa   :  { %p3788_p3 = scmp.ne.s32.totalorder %s28_s25, %s3787_s10  ;;  %p3793_p5 = scmp.lt.s32.totalorder %s3787_s10, %s3787_s10 }
   0xc   :  { %p3794_p6 = por %p3793_p5, %p3792_p4 }
   0xe   :  { %p3795_p7 = pnand %p3794_p6, %p3788_p3 }
  0x10   :  { %3798 = shalt.err (!%p3795_p7)
}
  0x11   :  { %s3872_s11 = smov 64   ;;  %s3873_s12 = smov 4  }
  0x12   :  { %33 = dma.hbm_to_vmem [thread:$0]  %s5387_s3, 448, %s28_s25, [#allocation3], %s3872_s11, %s3872_s11, %s3873_s12  }
  0x13   :  { %3865 = dma.done.wait [#allocation3], 448  }
  0x14   :  { %3866 = vsyncadd [#allocation3], 4294966848  ;;  %vm90_vm0 = vcmask 523264   ;;  %v59_v1 = vld [vmem:[%s5384_s0 + $0x8] sm:$0xff]  ;;  %v61_v2 = vld [vmem:[%s5384_s0 + $0x18] sm:$0xff]  ;;  %v39_v13 = vlaneseq  ;;  %v3874_v57 = vmov 0.0  }
  0x15   :  { %vm3936_vm1 = vmpackc.low %vm90_vm0, %vm90_vm0  ;;  %v2229_v3 = vld [vmem:[%s5384_s0 + $0x108] sm:$0xff]  ;;  %v3270_v4 = vpack.c.bf16 %v61_v2, %v59_v1  ;;  %v2231_v5 = vld [vmem:[%s5384_s0 + $0x118] sm:$0xff]  ;;  %vm3876_vm9 = vmmov 0   ;;  %vm673_vm10 = vcmask 1040384   ;;  %vm675_vm11 = vcmask 1041408   ;;  %s3878_s24 = smov [#allocation5]  }
  0x16   :  { %v58_v6 = vld [vmem:[%s5384_s0] sm:$0xff]  ;;  %v60_v7 = vld [vmem:[%s5384_s0 + $0x10] sm:$0xff]  ;;  %v3310_v8 = vpack.c.bf16 %v2231_v5, %v2229_v3  ;;  %v63_v12 = vld [vmem:[%s5384_s0 + $0x28] sm:$0xff]  ;;  %v4002_v26 = vshrl.u32 %v39_v13, 7  ;;  %v4010_v33 = vand.u32 127, %v39_v13  ;;  %vm677_vm12 = vcmask 1042432  }
  0x17   :  { %v3273_v9 = vpack.c.bf16 %v60_v7, %v58_v6  ;;  %v2228_v10 = vld [vmem:[%s5384_s0 + $0x100] sm:$0xff]  ;;  %v2230_v11 = vld [vmem:[%s5384_s0 + $0x110] sm:$0xff]  ;;  %3272 = vmatprep.subr.msk.bf16.mxu0 %vm3936_vm1, %v3270_v4  ;;  %v65_v15 = vld [vmem:[%s5384_s0 + $0x38] sm:$0xff]  ;;  %vm679_vm13 = vcmask 1043456   ;;  %s2168_s25 = sshll.u32 %s3878_s24, 4  ;;  %s5332_s25 = int_to_ptr.vmem [resolvable:$true] %s2168_s25 }
  0x18   :  { %v3313_v14 = vpack.c.bf16 %v2230_v11, %v2228_v10  ;;  %v2233_v16 = vld [vmem:[%s5384_s0 + $0x128] sm:$0xff]  ;;  %v2235_v17 = vld [vmem:[%s5384_s0 + $0x138] sm:$0xff]  ;;  %3312 = vmatprep.subr.msk.bf16.mxu1 %vm3936_vm1, %v3310_v8  ;;  %v3275_v18 = vpack.c.bf16 %v65_v15, %v63_v12  ;;  %v62_v20 = vld [vmem:[%s5384_s0 + $0x20] sm:$0xff]  ;;  %v4013_v34 = vadd.s32 1, %v4002_v26  ;;  %v41_v41 = vadd.s32 128, %v4010_v33 }
  0x19   :  { %3274 = vmatpush1.bf16.xpose.msra.mxu0 %v3273_v9  ;;  %v3315_v19 = vpack.c.bf16 %v2235_v17, %v2233_v16  ;;  %v64_v21 = vld [vmem:[%s5384_s0 + $0x30] sm:$0xff]  ;;  %v2232_v22 = vld [vmem:[%s5384_s0 + $0x120] sm:$0xff]  ;;  %v67_v24 = vld [vmem:[%s5384_s0 + $0x48] sm:$0xff]  ;;  %v44_v42 = vmul.u32 32, %v4002_v26  ;;  %vm53_vm4 = vcmp.eq.s32.totalorder %v4002_v26, 6 }
  0x1a   :  { %3314 = vmatpush1.bf16.xpose.msra.mxu1 %v3313_v14  ;;  %3277 = vmatprep.subr.msk.bf16.mxu0 %vm3936_vm1, %v3275_v18  ;;  %v2234_v23 = vld [vmem:[%s5384_s0 + $0x130] sm:$0xff]  ;;  %v69_v25 = vld [vmem:[%s5384_s0 + $0x58] sm:$0xff]  ;;  %v2237_v27 = vld [vmem:[%s5384_s0 + $0x148] sm:$0xff]  ;;  %v3278_v29 = vpack.c.bf16 %v64_v21, %v62_v20  ;;  %v48_v43 = vmul.u32 32, %v4013_v34 }
  0x1b   :  { %3317 = vmatprep.subr.msk.bf16.mxu1 %vm3936_vm1, %v3315_v19  ;;  %v2239_v28 = vld [vmem:[%s5384_s0 + $0x158] sm:$0xff]  ;;  %v3318_v30 = vpack.c.bf16 %v2234_v23, %v2232_v22  ;;  %v3280_v31 = vpack.c.bf16 %v69_v25, %v67_v24  ;;  %v66_v35 = vld [vmem:[%s5384_s0 + $0x40] sm:$0xff]  ;;  %v68_v36 = vld [vmem:[%s5384_s0 + $0x50] sm:$0xff]  ;;  %vm4048_vm2 = vcmp.ge.s32.totalorder %v41_v41, %v44_v42  ;;  %vm45_vm6 = vcmp.ge.s32.totalorder %v4010_v33, %v44_v42 }
  0x1c   :  { %v3320_v32 = vpack.c.bf16 %v2239_v28, %v2237_v27  ;;  %v2236_v37 = vld [vmem:[%s5384_s0 + $0x140] sm:$0xff]  ;;  %v2238_v38 = vld [vmem:[%s5384_s0 + $0x150] sm:$0xff]  ;;  %v71_v39 = vld [vmem:[%s5384_s0 + $0x68] sm:$0xff]  ;;  %v3283_v46 = vpack.c.bf16 %v68_v36, %v66_v35  ;;  %vm50_vm3 = vcmp.lt.s32.totalorder %v41_v41, %v48_v43  ;;  %vm49_vm7 = vcmp.lt.s32.totalorder %v4010_v33, %v48_v43 }
  0x1d   :  { %v73_v40 = vld [vmem:[%s5384_s0 + $0x78] sm:$0xff]  ;;  %v2241_v44 = vld [vmem:[%s5384_s0 + $0x168] sm:$0xff]  ;;  %v3323_v47 = vpack.c.bf16 %v2238_v38, %v2236_v37  ;;  %v70_v51 = vld [vmem:[%s5384_s0 + $0x60] sm:$0xff] }
  0x1e   :  { %v2243_v45 = vld [vmem:[%s5384_s0 + $0x178] sm:$0xff]  ;;  %v3285_v48 = vpack.c.bf16 %v73_v40, %v71_v39  ;;  %v72_v52 = vld [vmem:[%s5384_s0 + $0x70] sm:$0xff]  ;;  %v2240_v53 = vld [vmem:[%s5384_s0 + $0x160] sm:$0xff] }
  0x1f   :  { %v3325_v49 = vpack.c.bf16 %v2243_v45, %v2241_v44  ;;  %vm52_vm5 = vmand %vm4048_vm2, %vm50_vm3  ;;  %v2242_v54 = vld [vmem:[%s5384_s0 + $0x170] sm:$0xff]  ;;  %v75_v55 = vld [vmem:[%s5384_s0 + $0x88] sm:$0xff]  ;;  %v3288_v62 = vpack.c.bf16 %v72_v52, %v70_v51 }
  0x20   :  { %v77_v56 = vld [vmem:[%s5384_s0 + $0x98] sm:$0xff]  ;;  %v55_v58 = vsel %vm52_vm5, 0.03125, %v3874_v57  ;;  %v2245_v59 = vld [vmem:[%s5384_s0 + $0x188] sm:$0xff]  ;;  %v3328_v63 = vpack.c.bf16 %v2242_v54, %v2240_v53  ;;  %v74_v3 = vld [vmem:[%s5384_s0 + $0x80] sm:$0xff] }
  0x21   :  { %3279 = vmatpush1.bf16.xpose.msra.mxu0 %v3278_v29  ;;  %v2247_v60 = vld [vmem:[%s5384_s0 + $0x198] sm:$0xff]  ;;  %v4088_v61 = vsel %vm53_vm4, 0.0052083335, %v55_v58  ;;  %v3290_v1 = vpack.c.bf16 %v77_v56, %v75_v55  ;;  %v76_v4 = vld [vmem:[%s5384_s0 + $0x90] sm:$0xff]  ;;  %v2244_v5 = vld [vmem:[%s5384_s0 + $0x180] sm:$0xff] }
  0x22   :  { %3319 = vmatpush1.bf16.xpose.msra.mxu1 %v3318_v30  ;;  %3282 = vmatprep.subr.msk.bf16.mxu0 %vm3936_vm1, %v3280_v31  ;;  %v3330_v2 = vpack.c.bf16 %v2247_v60, %v2245_v59  ;;  %v2246_v6 = vld [vmem:[%s5384_s0 + $0x190] sm:$0xff]  ;;  %v79_v7 = vld [vmem:[%s5384_s0 + $0xa8] sm:$0xff]  ;;  %v81_v8 = vld [vmem:[%s5384_s0 + $0xb8] sm:$0xff]  ;;  %v3293_v11 = vpack.c.bf16 %v76_v4, %v74_v3 }
  0x23   :  { %3322 = vmatprep.subr.msk.bf16.mxu1 %vm3936_vm1, %v3320_v32  ;;  %2227 = vmatprep.mubr.msk.f32.mxu0 %vm90_vm0, %v4088_v61  ;;  %v2249_v9 = vld [vmem:[%s5384_s0 + $0x1a8] sm:$0xff]  ;;  %v2251_v10 = vld [vmem:[%s5384_s0 + $0x1b8] sm:$0xff]  ;;  %v3333_v12 = vpack.c.bf16 %v2246_v6, %v2244_v5  ;;  %v3295_v13 = vpack.c.bf16 %v81_v8, %v79_v7  ;;  %v78_v15 = vld [vmem:[%s5384_s0 + $0xa0] sm:$0xff] }
  0x24   :  { %2276 = vmatprep.mubr.msk.f32.mxu1 %vm90_vm0, %v4088_v61  ;;  %v3335_v14 = vpack.c.bf16 %v2251_v10, %v2249_v9  ;;  %v80_v16 = vld [vmem:[%s5384_s0 + $0xb0] sm:$0xff]  ;;  %v2248_v17 = vld [vmem:[%s5384_s0 + $0x1a0] sm:$0xff]  ;;  %v83_v19 = vld [vmem:[%s5384_s0 + $0xc8] sm:$0xff] }
  0x25   :  { %v2250_v18 = vld [vmem:[%s5384_s0 + $0x1b0] sm:$0xff]  ;;  %v85_v20 = vld [vmem:[%s5384_s0 + $0xd8] sm:$0xff]  ;;  %v2253_v21 = vld [vmem:[%s5384_s0 + $0x1c8] sm:$0xff]  ;;  %v3298_v23 = vpack.c.bf16 %v80_v16, %v78_v15 }
  0x26   :  { %v2255_v22 = vld [vmem:[%s5384_s0 + $0x1d8] sm:$0xff]  ;;  %v3338_v24 = vpack.c.bf16 %v2250_v18, %v2248_v17  ;;  %v3300_v25 = vpack.c.bf16 %v85_v20, %v83_v19  ;;  %v82_v28 = vld [vmem:[%s5384_s0 + $0xc0] sm:$0xff]  ;;  %v84_v29 = vld [vmem:[%s5384_s0 + $0xd0] sm:$0xff] }
  0x27   :  { %v3340_v27 = vpack.c.bf16 %v2255_v22, %v2253_v21  ;;  %v2252_v30 = vld [vmem:[%s5384_s0 + $0x1c0] sm:$0xff]  ;;  %v2254_v31 = vld [vmem:[%s5384_s0 + $0x1d0] sm:$0xff]  ;;  %v87_v32 = vld [vmem:[%s5384_s0 + $0xe8] sm:$0xff]  ;;  %v3303_v38 = vpack.c.bf16 %v84_v29, %v82_v28 }
  0x28   :  { %v89_v35 = vld [vmem:[%s5384_s0 + $0xf8] sm:$0xff]  ;;  %v2257_v36 = vld [vmem:[%s5384_s0 + $0x1e8] sm:$0xff]  ;;  %v3343_v39 = vpack.c.bf16 %v2254_v31, %v2252_v30  ;;  %v86_v44 = vld [vmem:[%s5384_s0 + $0xe0] sm:$0xff] }
  0x29   :  { %3284 = vmatpush1.bf16.xpose.msra.mxu0 %v3283_v46  ;;  %v2259_v37 = vld [vmem:[%s5384_s0 + $0x1f8] sm:$0xff]  ;;  %v3305_v40 = vpack.c.bf16 %v89_v35, %v87_v32  ;;  %v88_v45 = vld [vmem:[%s5384_s0 + $0xf0] sm:$0xff]  ;;  %v2256_v46 = vld [vmem:[%s5384_s0 + $0x1e0] sm:$0xff] }
  0x2a   :  { %3324 = vmatpush1.bf16.xpose.msra.mxu1 %v3323_v47  ;;  %3287 = vmatprep.subr.msk.bf16.mxu0 %vm3936_vm1, %v3285_v48  ;;  %v3345_v41 = vpack.c.bf16 %v2259_v37, %v2257_v36  ;;  %v2258_v47 = vld [vmem:[%s5384_s0 + $0x1f0] sm:$0xff]  ;;  %v364_v48 = vld [vmem:[%s5385_s1 + $0x8] sm:$0xff]  ;;  %v2297_v51 = vld [vmem:[%s5385_s1 + $0x118] sm:$0xff]  ;;  %v3308_v52 = vpack.c.bf16 %v88_v45, %v86_v44 }
  0x2b   :  { %3327 = vmatprep.subr.msk.bf16.mxu1 %vm3936_vm1, %v3325_v49  ;;  %v366_v49 = vld [vmem:[%s5385_s1 + $0x18] sm:$0xff]  ;;  %v2295_v50 = vld [vmem:[%s5385_s1 + $0x108] sm:$0xff]  ;;  %v3348_v53 = vpack.c.bf16 %v2258_v47, %v2256_v46  ;;  %vm51_vm8 = vmand %vm45_vm6, %vm49_vm7 }
  0x2c   :  { %v3350_v54 = vpack.c.bf16 %v366_v49, %v364_v48  ;;  %v3390_v55 = vpack.c.bf16 %v2297_v51, %v2295_v50  ;;  %v54_v42 = vsel %vm51_vm8, 0.03125, %v3874_v57  ;;  %v363_v33 = vld [vmem:[%s5385_s1] sm:$0xff]  ;;  %v365_v34 = vld [vmem:[%s5385_s1 + $0x10] sm:$0xff]  ;;  %v368_v58 = vld [vmem:[%s5385_s1 + $0x28] sm:$0xff] }
  0x2d   :  { %v2294_v43 = vld [vmem:[%s5385_s1 + $0x100] sm:$0xff]  ;;  %v2296_v56 = vld [vmem:[%s5385_s1 + $0x110] sm:$0xff]  ;;  %v370_v59 = vld [vmem:[%s5385_s1 + $0x38] sm:$0xff] }
  0x2e   :  { %v2299_v60 = vld [vmem:[%s5385_s1 + $0x128] sm:$0xff]  ;;  %v3355_v3 = vpack.c.bf16 %v370_v59, %v368_v58  ;;  %v367_v5 = vld [vmem:[%s5385_s1 + $0x20] sm:$0xff]  ;;  %v369_v6 = vld [vmem:[%s5385_s1 + $0x30] sm:$0xff] }
  0x2f   :  { %v2298_v7 = vld [vmem:[%s5385_s1 + $0x120] sm:$0xff]  ;;  %v2300_v8 = vld [vmem:[%s5385_s1 + $0x130] sm:$0xff]  ;;  %v372_v9 = vld [vmem:[%s5385_s1 + $0x48] sm:$0xff] }
  0x30   :  { %v374_v10 = vld [vmem:[%s5385_s1 + $0x58] sm:$0xff]  ;;  %v371_v17 = vld [vmem:[%s5385_s1 + $0x40] sm:$0xff]  ;;  %v373_v18 = vld [vmem:[%s5385_s1 + $0x50] sm:$0xff] }
  0x31   :  { %3289 = vmatpush1.bf16.xpose.msra.mxu0 %v3288_v62  ;;  %v2301_v62 = vld [vmem:[%s5385_s1 + $0x138] sm:$0xff]  ;;  %v3360_v15 = vpack.c.bf16 %v374_v10, %v372_v9  ;;  %v2304_v19 = vld [vmem:[%s5385_s1 + $0x150] sm:$0xff]  ;;  %v376_v20 = vld [vmem:[%s5385_s1 + $0x68] sm:$0xff] }
  0x32   :  { %3329 = vmatpush1.bf16.xpose.msra.mxu1 %v3328_v63  ;;  %3292 = vmatprep.subr.msk.bf16.mxu0 %vm3936_vm1, %v3290_v1  ;;  %v4243_v63 = vsel %vm53_vm4, 0.0052083335, %v54_v42  ;;  %v3353_v1 = vpack.c.bf16 %v365_v34, %v363_v33  ;;  %v3395_v4 = vpack.c.bf16 %v2301_v62, %v2299_v60  ;;  %v378_v21 = vld [vmem:[%s5385_s1 + $0x78] sm:$0xff]  ;;  %v2307_v22 = vld [vmem:[%s5385_s1 + $0x168] sm:$0xff]  ;;  %v375_v29 = vld [vmem:[%s5385_s1 + $0x60] sm:$0xff] }
  0x33   :  { %3332 = vmatprep.subr.msk.bf16.mxu1 %vm3936_vm1, %v3330_v2  ;;  %v3393_v2 = vpack.c.bf16 %v2296_v56, %v2294_v43  ;;  %v377_v30 = vld [vmem:[%s5385_s1 + $0x70] sm:$0xff]  ;;  %v2306_v31 = vld [vmem:[%s5385_s1 + $0x160] sm:$0xff]  ;;  %v380_v35 = vld [vmem:[%s5385_s1 + $0x88] sm:$0xff] }
  0x34   :  { %v2308_v32 = vld [vmem:[%s5385_s1 + $0x170] sm:$0xff]  ;;  %v382_v36 = vld [vmem:[%s5385_s1 + $0x98] sm:$0xff]  ;;  %v2311_v37 = vld [vmem:[%s5385_s1 + $0x188] sm:$0xff] }
  0x35   :  { %v379_v45 = vld [vmem:[%s5385_s1 + $0x80] sm:$0xff]  ;;  %v381_v46 = vld [vmem:[%s5385_s1 + $0x90] sm:$0xff]  ;;  %v384_v49 = vld [vmem:[%s5385_s1 + $0xa8] sm:$0xff] }
  0x36   :  { %v2310_v47 = vld [vmem:[%s5385_s1 + $0x180] sm:$0xff]  ;;  %v2312_v48 = vld [vmem:[%s5385_s1 + $0x190] sm:$0xff]  ;;  %v386_v50 = vld [vmem:[%s5385_s1 + $0xb8] sm:$0xff] }
  0x37   :  { %v2315_v51 = vld [vmem:[%s5385_s1 + $0x1a8] sm:$0xff]  ;;  %v383_v33 = vld [vmem:[%s5385_s1 + $0xa0] sm:$0xff]  ;;  %v385_v34 = vld [vmem:[%s5385_s1 + $0xb0] sm:$0xff] }
  0x38   :  { %v2314_v43 = vld [vmem:[%s5385_s1 + $0x1a0] sm:$0xff]  ;;  %v2316_v56 = vld [vmem:[%s5385_s1 + $0x1b0] sm:$0xff]  ;;  %v388_v58 = vld [vmem:[%s5385_s1 + $0xc8] sm:$0xff] }
  0x39   :  { %3294 = vmatpush1.bf16.xpose.msra.mxu0 %v3293_v11  ;;  %v2303_v11 = vld [vmem:[%s5385_s1 + $0x148] sm:$0xff]  ;;  %v390_v59 = vld [vmem:[%s5385_s1 + $0xd8] sm:$0xff]  ;;  %v682_v0 = vld [vmem:[%s5386_s2] sm:$0xff] }
  0x3a   :  { %3334 = vmatpush1.bf16.xpose.msra.mxu1 %v3333_v12  ;;  %3297 = vmatprep.subr.msk.bf16.mxu0 %vm3936_vm1, %v3295_v13  ;;  %v2305_v12 = vld [vmem:[%s5385_s1 + $0x158] sm:$0xff]  ;;  %v3358_v13 = vpack.c.bf16 %v369_v6, %v367_v5  ;;  %v2319_v60 = vld [vmem:[%s5385_s1 + $0x1c8] sm:$0xff]  ;;  %v387_v5 = vld [vmem:[%s5385_s1 + $0xc0] sm:$0xff] }
  0x3b   :  { %3337 = vmatprep.subr.msk.bf16.mxu1 %vm3936_vm1, %v3335_v14  ;;  %v3398_v14 = vpack.c.bf16 %v2300_v8, %v2298_v7  ;;  %v3400_v16 = vpack.c.bf16 %v2305_v12, %v2303_v11  ;;  %v2321_v62 = vld [vmem:[%s5385_s1 + $0x1d8] sm:$0xff]  ;;  %v389_v6 = vld [vmem:[%s5385_s1 + $0xd0] sm:$0xff]  ;;  %v2318_v7 = vld [vmem:[%s5385_s1 + $0x1c0] sm:$0xff] }
  0x3c   :  { %v2320_v8 = vld [vmem:[%s5385_s1 + $0x1d0] sm:$0xff]  ;;  %v392_v9 = vld [vmem:[%s5385_s1 + $0xe8] sm:$0xff]  ;;  %v394_v10 = vld [vmem:[%s5385_s1 + $0xf8] sm:$0xff] }
  0x3d   :  { %v2323_v11 = vld [vmem:[%s5385_s1 + $0x1e8] sm:$0xff]  ;;  %v2325_v12 = vld [vmem:[%s5385_s1 + $0x1f8] sm:$0xff] }
  0x41   :  { %3299 = vmatpush1.bf16.xpose.msra.mxu0 %v3298_v23  ;;  %v2309_v23 = vld [vmem:[%s5385_s1 + $0x178] sm:$0xff] }
  0x42   :  { %3339 = vmatpush1.bf16.xpose.msra.mxu1 %v3338_v24  ;;  %3302 = vmatprep.subr.msk.bf16.mxu0 %vm3936_vm1, %v3300_v25  ;;  %v3363_v24 = vpack.c.bf16 %v373_v18, %v371_v17  ;;  %v3405_v28 = vpack.c.bf16 %v2309_v23, %v2307_v22  ;;  %v391_v17 = vld [vmem:[%s5385_s1 + $0xe0] sm:$0xff]  ;;  %v393_v18 = vld [vmem:[%s5385_s1 + $0xf0] sm:$0xff]  ;;  %v683_v22 = vld [vmem:[%s5386_s2 + $0x8] sm:$0xff] }
  0x43   :  { %3342 = vmatprep.subr.msk.bf16.mxu1 %vm3936_vm1, %v3340_v27  ;;  %v3365_v27 = vpack.c.bf16 %v378_v21, %v376_v20  ;;  %v3388_v20 = vpack.c.bf16 %v393_v18, %v391_v17  ;;  %v684_v23 = vld [vmem:[%s5386_s2 + $0x10] sm:$0xff] }
  0x49   :  { %3304 = vmatpush1.bf16.xpose.msra.mxu0 %v3303_v38  ;;  %v2313_v38 = vld [vmem:[%s5385_s1 + $0x198] sm:$0xff] }
  0x4a   :  { %3344 = vmatpush1.bf16.xpose.msra.mxu1 %v3343_v39  ;;  %3307 = vmatprep.subr.msk.bf16.mxu0 %vm3936_vm1, %v3305_v40  ;;  %v3368_v39 = vpack.c.bf16 %v377_v30, %v375_v29  ;;  %v3408_v40 = vpack.c.bf16 %v2308_v32, %v2306_v31  ;;  %v3410_v44 = vpack.c.bf16 %v2313_v38, %v2311_v37  ;;  %v687_v29 = vld [vmem:[%s5386_s2 + $0x28] sm:$0xff]  ;;  %v688_v31 = vld [vmem:[%s5386_s2 + $0x30] sm:$0xff]  ;;  %v689_v32 = vld [vmem:[%s5386_s2 + $0x38] sm:$0xff] }
  0x4b   :  { %3347 = vmatprep.subr.msk.bf16.mxu1 %vm3936_vm1, %v3345_v41  ;;  %v3370_v41 = vpack.c.bf16 %v382_v36, %v380_v35  ;;  %v3440_v35 = vpack.c.bf16 %v689_v32, %v688_v31  ;;  %v690_v36 = vld [vmem:[%s5386_s2 + $0x40] sm:$0xff]  ;;  %v691_v37 = vld [vmem:[%s5386_s2 + $0x48] sm:$0xff] }
  0x4c   :  { %v3443_v38 = vpack.c.bf16 %v691_v37, %v690_v36 }
  0x51   :  { %3309 = vmatpush1.bf16.xpose.msra.mxu0 %v3308_v52  ;;  %v2317_v52 = vld [vmem:[%s5385_s1 + $0x1b8] sm:$0xff] }
  0x52   :  { %3349 = vmatpush1.bf16.xpose.msra.mxu1 %v3348_v53  ;;  %3352 = vmatprep.subr.msk.bf16.mxu0 %vm3936_vm1, %v3350_v54  ;;  %v3373_v53 = vpack.c.bf16 %v381_v46, %v379_v45  ;;  %v3413_v54 = vpack.c.bf16 %v2312_v48, %v2310_v47  ;;  %v3415_v42 = vpack.c.bf16 %v2317_v52, %v2315_v51  ;;  %v695_v45 = vld [vmem:[%s5386_s2 + $0x68] sm:$0xff]  ;;  %v696_v47 = vld [vmem:[%s5386_s2 + $0x70] sm:$0xff]  ;;  %v697_v48 = vld [vmem:[%s5386_s2 + $0x78] sm:$0xff] }
  0x53   :  { %3392 = vmatprep.subr.msk.bf16.mxu1 %vm3936_vm1, %v3390_v55  ;;  %v3375_v55 = vpack.c.bf16 %v386_v50, %v384_v49  ;;  %v3452_v49 = vpack.c.bf16 %v697_v48, %v696_v47 }
  0x58   :  { %207 = vmatmul.mubr.f32.vlgmr.msra.gmra.mrb[0].mxu0 %v4243_v63 }
  0x59   :  { %358 = vmatmul.mubr.f32.vlgmr.msra.gmra.mrb[0].mxu1 %v4243_v63  ;;  %3354 = vmatpush1.bf16.xpose.msra.mxu0 %v3353_v1  ;;  %v3378_v1 = vpack.c.bf16 %v385_v34, %v383_v33 }
  0x5a   :  { %3394 = vmatpush1.bf16.xpose.msra.mxu1 %v3393_v2  ;;  %3357 = vmatprep.subr.msk.bf16.mxu0 %vm3936_vm1, %v3355_v3  ;;  %v3418_v2 = vpack.c.bf16 %v2316_v56, %v2314_v43  ;;  %v3380_v3 = vpack.c.bf16 %v390_v59, %v388_v58 }
  0x5b   :  { %3397 = vmatprep.subr.msk.bf16.mxu1 %vm3936_vm1, %v3395_v4  ;;  %2293 = vmatprep.mubr.msk.f32.mxu0 %vm90_vm0, %v4088_v61  ;;  %v3420_v4 = vpack.c.bf16 %v2321_v62, %v2319_v60 }
  0x5c   :  { %2342 = vmatprep.mubr.msk.f32.mxu1 %vm90_vm0, %v4088_v61  ;;  %v2302_v61 = vld [vmem:[%s5385_s1 + $0x140] sm:$0xff] }
  0x5d   :  { %v3403_v25 = vpack.c.bf16 %v2304_v19, %v2302_v61  ;;  %v2322_v61 = vld [vmem:[%s5385_s1 + $0x1e0] sm:$0xff]  ;;  %v2324_v19 = vld [vmem:[%s5385_s1 + $0x1f0] sm:$0xff] }
  0x5e   :  { %v3428_v21 = vpack.c.bf16 %v2324_v19, %v2322_v61 }
  0x61   :  { %3359 = vmatpush1.bf16.xpose.msra.mxu0 %v3358_v13  ;;  %v3383_v13 = vpack.c.bf16 %v389_v6, %v387_v5 }
  0x62   :  { %3399 = vmatpush1.bf16.xpose.msra.mxu1 %v3398_v14  ;;  %3362 = vmatprep.subr.msk.bf16.mxu0 %vm3936_vm1, %v3360_v15  ;;  %v3423_v14 = vpack.c.bf16 %v2320_v8, %v2318_v7  ;;  %v3385_v15 = vpack.c.bf16 %v394_v10, %v392_v9  ;;  %v2344_v9 = vld [vmem:[%s5386_s2 + $0x80] sm:$0xff]  ;;  %v2345_v10 = vld [vmem:[%s5386_s2 + $0x88] sm:$0xff] }
  0x63   :  { %3402 = vmatprep.subr.msk.bf16.mxu1 %vm3936_vm1, %v3400_v16  ;;  %v3425_v16 = vpack.c.bf16 %v2325_v12, %v2323_v11  ;;  %v3479_v12 = vpack.c.bf16 %v2345_v10, %v2344_v9  ;;  %v2382_v9 = vld [vmem:[%s5386_s2 + $0x128] sm:$0xff] }
  0x69   :  { %3364 = vmatpush1.bf16.xpose.msra.mxu0 %v3363_v24  ;;  %v3875_v24 = vmov 0.0|0.0  }
  0x6a   :  { %3404 = vmatpush1.bf16.xpose.msra.mxu1 %v3403_v25  ;;  %3367 = vmatprep.subr.msk.bf16.mxu0 %vm3936_vm1, %v3365_v27  ;;  %v3431_v25 = vpack.c.bf16 %v683_v22, %v682_v0 }
  0x6b   :  { %3407 = vmatprep.subr.msk.bf16.mxu1 %vm3936_vm1, %v3405_v28  ;;  %v686_v28 = vld [vmem:[%s5386_s2 + $0x20] sm:$0xff] }
  0x6c   :  { %v3437_v30 = vpack.c.bf16 %v687_v29, %v686_v28 }
  0x71   :  { %3369 = vmatpush1.bf16.xpose.msra.mxu0 %v3368_v39  ;;  %v692_v39 = vld [vmem:[%s5386_s2 + $0x50] sm:$0xff] }
  0x72   :  { %3409 = vmatpush1.bf16.xpose.msra.mxu1 %v3408_v40  ;;  %3372 = vmatprep.subr.msk.bf16.mxu0 %vm3936_vm1, %v3370_v41  ;;  %v693_v40 = vld [vmem:[%s5386_s2 + $0x58] sm:$0xff] }
  0x73   :  { %3412 = vmatprep.subr.msk.bf16.mxu1 %vm3936_vm1, %v3410_v44  ;;  %v3446_v41 = vpack.c.bf16 %v693_v40, %v692_v39  ;;  %v694_v44 = vld [vmem:[%s5386_s2 + $0x60] sm:$0xff] }
  0x74   :  { %v3449_v46 = vpack.c.bf16 %v695_v45, %v694_v44  ;;  %v2348_v44 = vld [vmem:[%s5386_s2 + $0xa0] sm:$0xff]  ;;  %v2349_v45 = vld [vmem:[%s5386_s2 + $0xa8] sm:$0xff] }
  0x79   :  { %3374 = vmatpush1.bf16.xpose.msra.mxu0 %v3373_v53 }
  0x7a   :  { %3414 = vmatpush1.bf16.xpose.msra.mxu1 %v3413_v54  ;;  %3377 = vmatprep.subr.msk.bf16.mxu0 %vm3936_vm1, %v3375_v55 }
  0x7b   :  { %3417 = vmatprep.subr.msk.bf16.mxu1 %vm3936_vm1, %v3415_v42 }
  0x81   :  { %3379 = vmatpush1.bf16.xpose.msra.mxu0 %v3378_v1 }
  0x82   :  { %3419 = vmatpush1.bf16.xpose.msra.mxu1 %v3418_v2  ;;  %3382 = vmatprep.subr.msk.bf16.mxu0 %vm3936_vm1, %v3380_v3 }
  0x83   :  { %3422 = vmatprep.subr.msk.bf16.mxu1 %vm3936_vm1, %v3420_v4 }
  0x89   :  { %3384 = vmatpush1.bf16.xpose.msra.mxu0 %v3383_v13 }
  0x8a   :  { %3424 = vmatpush1.bf16.xpose.msra.mxu1 %v3423_v14  ;;  %3387 = vmatprep.subr.msk.bf16.mxu0 %vm3936_vm1, %v3385_v15 }
  0x8b   :  { %3427 = vmatprep.subr.msk.bf16.mxu1 %vm3936_vm1, %v3425_v16 }
  0x91   :  { %3389 = vmatpush1.bf16.xpose.msra.mxu0 %v3388_v20 }
  0x92   :  { %3429 = vmatpush1.bf16.xpose.msra.mxu1 %v3428_v21  ;;  %3430 = vmatprep.subr.bf16.mxu0 %v3875_v24 }
  0x93   :  { %3454 = vmatprep.subr.bf16.mxu1 %v3875_v24 }
  0x98   :  { %508 = vmatmul.mubr.f32.vlgmr.msra.gmra.mrb[2].mxu0 %v4243_v63 }
  0x99   :  { %659 = vmatmul.mubr.f32.vlgmr.msra.gmra.mrb[2].mxu1 %v4243_v63  ;;  %v685_v63 = vld [vmem:[%s5386_s2 + $0x18] sm:$0xff]  ;;  %3432 = vmatpush3.bf16.msra.mxu0 %v3431_v25 }
  0x9a   :  { %v3434_v27 = vpack.c.bf16 %v685_v63, %v684_v23  ;;  %3433 = vmatprep.subr.bf16.mxu0 %v3875_v24  ;;  %2812 = vmatprep.mubr.msk.f32.mxu0 %vm3876_vm9, %v3874_v57  ;;  %v2346_v23 = vld [vmem:[%s5386_s2 + $0x90] sm:$0xff]  ;;  %v2347_v25 = vld [vmem:[%s5386_s2 + $0x98] sm:$0xff] }
  0x9b   :  { %2847 = vmatprep.mubr.msk.f32.mxu1 %vm3876_vm9, %v3874_v57 }
  0x9d   :  { %3435 = vmatpush3.bf16.msra.mxu0 %v3434_v27 }
  0x9e   :  { %3436 = vmatprep.subr.bf16.mxu0 %v3875_v24 }
  0xa1   :  { %3438 = vmatpush3.bf16.msra.mxu0 %v3437_v30 }
  0xa2   :  { %3439 = vmatprep.subr.bf16.mxu0 %v3875_v24 }
  0xa5   :  { %3441 = vmatpush3.bf16.msra.mxu0 %v3440_v35 }
  0xa6   :  { %3442 = vmatprep.subr.bf16.mxu0 %v3875_v24 }
  0xa9   :  { %3444 = vmatpush3.bf16.msra.mxu0 %v3443_v38  ;;  %v3482_v38 = vpack.c.bf16 %v2347_v25, %v2346_v23  ;;  %v2410_v25 = vld [vmem:[%s5386_s2 + $0x180] sm:$0xff] }
  0xaa   :  { %3445 = vmatprep.subr.bf16.mxu0 %v3875_v24 }
  0xad   :  { %3447 = vmatpush3.bf16.msra.mxu0 %v3446_v41 }
  0xae   :  { %3448 = vmatprep.subr.bf16.mxu0 %v3875_v24 }
  0xb1   :  { %3450 = vmatpush3.bf16.msra.mxu0 %v3449_v46 }
  0xb2   :  { %3451 = vmatprep.subr.bf16.mxu0 %v3875_v24 }
  0xb5   :  { %3453 = vmatpush3.bf16.msra.mxu0 %v3452_v49 }
  0xb6   :  { %3478 = vmatprep.subr.bf16.mxu0 %v3875_v24 }
 0x12b   :  { %v208_v50 = vpop.f32.mrb[0].mxu0 }
 0x12c   :  { %v359_v51 = vpop.f32.mrb[0].mxu1  ;;  %v210_v52 = vpop.f32.mrb[1].mxu0  ;;  %v879_v53 = vrot.slane %v208_v50, 1  ;;  %v1092_v54 = vrot.slane %v208_v50, 2  ;;  %v1305_v55 = vrot.slane %v208_v50, 3  ;;  %v1518_v42 = vrot.slane %v208_v50, 4 }
 0x12d   :  { %v361_v33 = vpop.f32.mrb[1].mxu1  ;;  %v665_v34 = vrot.slane %v359_v51, 7  ;;  %v1094_v43 = vrot.slane %v359_v51, 1  ;;  %v1307_v56 = vrot.slane %v359_v51, 2  ;;  %v1520_v58 = vrot.slane %v359_v51, 3  ;;  %v2351_v52 = vld [vmem:[%s5386_s2 + $0xb8] sm:$0xff] }
 0x12e   :  { %v885_v59 = vsel %vm673_vm10, %v879_v53, %v359_v51  ;;  %v1733_v60 = vrot.slane %v208_v50, 5  ;;  %v1735_v62 = vrot.slane %v359_v51, 4  ;;  %v1948_v1 = vrot.slane %v208_v50, 6  ;;  %v2354_v33 = vld [vmem:[%s5386_s2 + $0xd0] sm:$0xff] }
 0x12f   :  { %v674_v2 = vsel %vm673_vm10, %v208_v50, %v665_v34  ;;  %v1098_v3 = vsel %vm673_vm10, %v1092_v54, %v1094_v43  ;;  %v1311_v4 = vsel %vm673_vm10, %v1305_v55, %v1307_v56  ;;  %v1526_v5 = vsel %vm673_vm10, %v1518_v42, %v1520_v58  ;;  %v2352_v54 = vld [vmem:[%s5386_s2 + $0xc0] sm:$0xff]  ;;  %v2353_v55 = vld [vmem:[%s5386_s2 + $0xc8] sm:$0xff]  ;;  %v2355_v34 = vld [vmem:[%s5386_s2 + $0xd8] sm:$0xff] }
 0x130   :  { %v1741_v6 = vsel %vm673_vm10, %v1733_v60, %v1735_v62  ;;  %v1950_v7 = vrot.slane %v359_v51, 5  ;;  %v3485_v50 = vpack.c.bf16 %v2349_v45, %v2348_v44  ;;  %v2350_v51 = vld [vmem:[%s5386_s2 + $0xb0] sm:$0xff]  ;;  %v3491_v42 = vpack.c.bf16 %v2353_v55, %v2352_v54  ;;  %v2356_v56 = vld [vmem:[%s5386_s2 + $0xe0] sm:$0xff]  ;;  %v2357_v58 = vld [vmem:[%s5386_s2 + $0xe8] sm:$0xff] }
 0x131   :  { %v3488_v53 = vpack.c.bf16 %v2351_v52, %v2350_v51  ;;  %v3494_v43 = vpack.c.bf16 %v2355_v34, %v2354_v33  ;;  %v2358_v60 = vld [vmem:[%s5386_s2 + $0xf0] sm:$0xff]  ;;  %v2359_v62 = vld [vmem:[%s5386_s2 + $0xf8] sm:$0xff]  ;;  %v795_v44 = vld [vmem:[%s5388_s4 + $0x20] sm:$0xff] }
 0x132   :  { %v1956_v8 = vsel %vm673_vm10, %v1948_v1, %v1950_v7  ;;  %v3500_v1 = vpack.c.bf16 %v2359_v62, %v2358_v60  ;;  %v2414_v45 = vld [vmem:[%s5386_s2 + $0x1a0] sm:$0xff]  ;;  %v797_v51 = vld [vmem:[%s5388_s4 + $0x30] sm:$0xff]  ;;  %v798_v52 = vld [vmem:[%s5388_s4 + $0x38] sm:$0xff] }
 0x133   :  { %v2417_v54 = vld [vmem:[%s5386_s2 + $0x1b8] sm:$0xff]  ;;  %v3464_v55 = vpack.c.bf16 %v798_v52, %v797_v51  ;;  %v799_v33 = vld [vmem:[%s5388_s4 + $0x40] sm:$0xff]  ;;  %v800_v34 = vld [vmem:[%s5388_s4 + $0x48] sm:$0xff] }
 0x134   :  { %v801_v60 = vld [vmem:[%s5388_s4 + $0x50] sm:$0xff]  ;;  %v802_v62 = vld [vmem:[%s5388_s4 + $0x58] sm:$0xff] }
 0x135   :  { %v2479_v51 = vld [vmem:[%s5386_s2 + $0x298] sm:$0xff] }
 0x16b   :  { %v509_v11 = vpop.f32.mrb[2].mxu0 }
 0x16c   :  { %v660_v13 = vpop.f32.mrb[2].mxu1  ;;  %v511_v14 = vpop.f32.mrb[3].mxu0  ;;  %v668_v15 = vrot.slane %v509_v11, 6  ;;  %v881_v16 = vrot.slane %v509_v11, 7  ;;  %v1099_v17 = vsel %vm675_vm11, %v1098_v3, %v509_v11  ;;  %v1309_v18 = vrot.slane %v509_v11, 1  ;;  %v2378_v3 = vld [vmem:[%s5386_s2 + $0x108] sm:$0xff] }
 0x16d   :  { %v662_v61 = vpop.f32.mrb[3].mxu1  ;;  %v671_v19 = vrot.slane %v660_v13, 5  ;;  %v883_v20 = vrot.slane %v660_v13, 6  ;;  %v1096_v21 = vrot.slane %v660_v13, 7  ;;  %v1522_v0 = vrot.slane %v509_v11, 2  ;;  %v2385_v14 = vld [vmem:[%s5386_s2 + $0x140] sm:$0xff] }
 0x16e   :  { %v676_v22 = vsel %vm675_vm11, %v674_v2, %v668_v15  ;;  %v886_v63 = vsel %vm675_vm11, %v885_v59, %v881_v16  ;;  %v1312_v27 = vsel %vm675_vm11, %v1311_v4, %v1309_v18  ;;  %v1524_v28 = vrot.slane %v660_v13, 1  ;;  %v2377_v2 = vld [vmem:[%s5386_s2 + $0x100] sm:$0xff]  ;;  %v2386_v15 = vld [vmem:[%s5386_s2 + $0x148] sm:$0xff]  ;;  %v2388_v18 = vld [vmem:[%s5386_s2 + $0x158] sm:$0xff] }
 0x16f   :  { %v678_v29 = vsel %vm677_vm12, %v676_v22, %v671_v19  ;;  %v887_v30 = vsel %vm677_vm12, %v886_v63, %v883_v20  ;;  %v4525_v31 = vsel %vm677_vm12, %v1099_v17, %v1096_v21  ;;  %v4528_v32 = vsel %vm677_vm12, %v1312_v27, %v660_v13  ;;  %v2387_v17 = vld [vmem:[%s5386_s2 + $0x150] sm:$0xff]  ;;  %v2389_v19 = vld [vmem:[%s5386_s2 + $0x160] sm:$0xff]  ;;  %v2390_v20 = vld [vmem:[%s5386_s2 + $0x168] sm:$0xff] }
 0x170   :  { %2813 = vmatmul.mubr.msk.f32.vlgmr.msra.gmra.mrb[4].mxu0 %vm679_vm13, %v678_v29  ;;  %v1527_v35 = vsel %vm675_vm11, %v1526_v5, %v1522_v0  ;;  %v1737_v36 = vrot.slane %v509_v11, 3  ;;  %v1739_v37 = vrot.slane %v660_v13, 2  ;;  %v1952_v40 = vrot.slane %v509_v11, 4  ;;  %v2379_v5 = vld [vmem:[%s5386_s2 + $0x110] sm:$0xff]  ;;  %v2392_v22 = vld [vmem:[%s5386_s2 + $0x178] sm:$0xff]  ;;  %v2411_v63 = vld [vmem:[%s5386_s2 + $0x188] sm:$0xff] }
 0x171   :  { %3480 = vmatpush3.bf16.msra.mxu0 %v3479_v12  ;;  %2882 = vmatprep.mubr.msk.f32.mxu0 %vm3876_vm9, %v3874_v57  ;;  %v4535_v39 = vsel %vm677_vm12, %v1527_v35, %v1524_v28  ;;  %v1954_v41 = vrot.slane %v660_v13, 3  ;;  %v3497_v59 = vpack.c.bf16 %v2357_v58, %v2356_v56  ;;  %v3527_v4 = vpack.c.bf16 %v2378_v3, %v2377_v2  ;;  %v2383_v11 = vld [vmem:[%s5386_s2 + $0x130] sm:$0xff]  ;;  %v2384_v12 = vld [vmem:[%s5386_s2 + $0x138] sm:$0xff]  ;;  %v791_v28 = vld [vmem:[%s5388_s4] sm:$0xff] }
 0x172   :  { %3481 = vmatprep.subr.bf16.mxu0 %v3875_v24  ;;  %v1742_v46 = vsel %vm675_vm11, %v1741_v6, %v1737_v36  ;;  %v1957_v48 = vsel %vm675_vm11, %v1956_v8, %v1952_v40  ;;  %v2380_v6 = vld [vmem:[%s5386_s2 + $0x118] sm:$0xff]  ;;  %v2381_v8 = vld [vmem:[%s5386_s2 + $0x120] sm:$0xff]  ;;  %v3536_v13 = vpack.c.bf16 %v2384_v12, %v2383_v11  ;;  %v3539_v16 = vpack.c.bf16 %v2386_v15, %v2385_v14  ;;  %v2391_v0 = vld [vmem:[%s5386_s2 + $0x170] sm:$0xff] }
 0x173   :  { %v4546_v47 = vsel %vm677_vm12, %v1742_v46, %v1739_v37  ;;  %v4550_v49 = vsel %vm677_vm12, %v1957_v48, %v1954_v41  ;;  %v3530_v7 = vpack.c.bf16 %v2380_v6, %v2379_v5  ;;  %v3533_v10 = vpack.c.bf16 %v2382_v9, %v2381_v8  ;;  %v792_v29 = vld [vmem:[%s5388_s4 + $0x8] sm:$0xff]  ;;  %v2413_v35 = vld [vmem:[%s5386_s2 + $0x198] sm:$0xff]  ;;  %v793_v37 = vld [vmem:[%s5388_s4 + $0x10] sm:$0xff] }
 0x174   :  { %v3542_v61 = vpack.c.bf16 %v2388_v18, %v2387_v17  ;;  %v3545_v21 = vpack.c.bf16 %v2390_v20, %v2389_v19  ;;  %v3548_v23 = vpack.c.bf16 %v2392_v22, %v2391_v0  ;;  %v3575_v27 = vpack.c.bf16 %v2411_v63, %v2410_v25  ;;  %v2415_v46 = vld [vmem:[%s5386_s2 + $0x1a8] sm:$0xff]  ;;  %v2421_v2 = vld [vmem:[%s5386_s2 + $0x1d8] sm:$0xff]  ;;  %v2422_v5 = vld [vmem:[%s5386_s2 + $0x1e0] sm:$0xff] }
 0x175   :  { %3483 = vmatpush3.bf16.msra.mxu0 %v3482_v38  ;;  %v3455_v36 = vpack.c.bf16 %v792_v29, %v791_v28  ;;  %v794_v38 = vld [vmem:[%s5388_s4 + $0x18] sm:$0xff]  ;;  %v2419_v56 = vld [vmem:[%s5386_s2 + $0x1c8] sm:$0xff]  ;;  %v3467_v58 = vpack.c.bf16 %v800_v34, %v799_v33  ;;  %v3470_v3 = vpack.c.bf16 %v802_v62, %v801_v60  ;;  %v2424_v8 = vld [vmem:[%s5386_s2 + $0x1f0] sm:$0xff] }
 0x176   :  { %3484 = vmatprep.subr.bf16.mxu0 %v3875_v24  ;;  %v3458_v41 = vpack.c.bf16 %v794_v38, %v793_v37  ;;  %v2423_v6 = vld [vmem:[%s5386_s2 + $0x1e8] sm:$0xff]  ;;  %v2425_v9 = vld [vmem:[%s5386_s2 + $0x1f8] sm:$0xff]  ;;  %v2443_v14 = vld [vmem:[%s5386_s2 + $0x200] sm:$0xff] }
 0x177   :  { %3456 = vmatpush3.bf16.msra.mxu1 %v3455_v36  ;;  %v804_v11 = vld [vmem:[%s5388_s4 + $0x68] sm:$0xff]  ;;  %v3596_v12 = vpack.c.bf16 %v2425_v9, %v2424_v8  ;;  %v806_v17 = vld [vmem:[%s5388_s4 + $0x78] sm:$0xff]  ;;  %v2445_v19 = vld [vmem:[%s5386_s2 + $0x210] sm:$0xff] }
 0x178   :  { %3457 = vmatprep.subr.bf16.mxu1 %v3875_v24  ;;  %v2444_v15 = vld [vmem:[%s5386_s2 + $0x208] sm:$0xff]  ;;  %v2446_v20 = vld [vmem:[%s5386_s2 + $0x218] sm:$0xff]  ;;  %v2447_v0 = vld [vmem:[%s5386_s2 + $0x220] sm:$0xff] }
 0x179   :  { %3486 = vmatpush3.bf16.msra.mxu0 %v3485_v50  ;;  %v3581_v50 = vpack.c.bf16 %v2415_v46, %v2414_v45  ;;  %v3623_v18 = vpack.c.bf16 %v2444_v15, %v2443_v14  ;;  %v2448_v22 = vld [vmem:[%s5386_s2 + $0x228] sm:$0xff]  ;;  %v2450_v25 = vld [vmem:[%s5386_s2 + $0x238] sm:$0xff]  ;;  %v2455_v37 = vld [vmem:[%s5386_s2 + $0x260] sm:$0xff] }
 0x17a   :  { %3487 = vmatprep.subr.bf16.mxu0 %v3875_v24  ;;  %v2452_v28 = vld [vmem:[%s5386_s2 + $0x248] sm:$0xff]  ;;  %v2476_v45 = vld [vmem:[%s5386_s2 + $0x280] sm:$0xff]  ;;  %v2511_v9 = vld [vmem:[%s5386_s2 + $0x310] sm:$0xff] }
 0x17b   :  { %3459 = vmatpush3.bf16.msra.mxu1 %v3458_v41  ;;  %v2456_v38 = vld [vmem:[%s5386_s2 + $0x268] sm:$0xff]  ;;  %v2457_v41 = vld [vmem:[%s5386_s2 + $0x270] sm:$0xff]  ;;  %v2484_v34 = vld [vmem:[%s5386_s2 + $0x2c0] sm:$0xff] }
 0x17c   :  { %3460 = vmatprep.subr.bf16.mxu1 %v3875_v24  ;;  %v2477_v46 = vld [vmem:[%s5386_s2 + $0x288] sm:$0xff]  ;;  %v2488_v62 = vld [vmem:[%s5386_s2 + $0x2e0] sm:$0xff]  ;;  %v2516_v15 = vld [vmem:[%s5386_s2 + $0x338] sm:$0xff] }
 0x17d   :  { %3489 = vmatpush3.bf16.msra.mxu0 %v3488_v53  ;;  %v2416_v53 = vld [vmem:[%s5386_s2 + $0x1b0] sm:$0xff] }
 0x17e   :  { %3490 = vmatprep.subr.bf16.mxu0 %v3875_v24 }
 0x181   :  { %3492 = vmatpush3.bf16.msra.mxu0 %v3491_v42  ;;  %v3584_v42 = vpack.c.bf16 %v2417_v54, %v2416_v53  ;;  %v2480_v53 = vld [vmem:[%s5386_s2 + $0x2a0] sm:$0xff]  ;;  %v2481_v54 = vld [vmem:[%s5386_s2 + $0x2a8] sm:$0xff] }
 0x182   :  { %3493 = vmatprep.subr.bf16.mxu0 %v3875_v24 }
 0x185   :  { %3495 = vmatpush3.bf16.msra.mxu0 %v3494_v43  ;;  %v2418_v43 = vld [vmem:[%s5386_s2 + $0x1c0] sm:$0xff] }
 0x186   :  { %3496 = vmatprep.subr.bf16.mxu0 %v3875_v24 }
 0x189   :  { %3498 = vmatpush3.bf16.msra.mxu0 %v3497_v59  ;;  %v3587_v59 = vpack.c.bf16 %v2419_v56, %v2418_v43  ;;  %v2485_v43 = vld [vmem:[%s5386_s2 + $0x2c8] sm:$0xff] }
 0x18a   :  { %3499 = vmatprep.subr.bf16.mxu0 %v3875_v24  ;;  %v3683_v56 = vpack.c.bf16 %v2485_v43, %v2484_v34  ;;  %v2368_v34 = vld [vmem:[%s5388_s4 + $0xb8] sm:$0xff] }
 0x18d   :  { %3501 = vmatpush3.bf16.msra.mxu0 %v3500_v1  ;;  %v2420_v1 = vld [vmem:[%s5386_s2 + $0x1d0] sm:$0xff] }
 0x18e   :  { %3526 = vmatprep.subr.bf16.mxu0 %v3875_v24 }
 0x190   :  { %2883 = vmatmul.mubr.msk.f32.vlgmr.msra.gmra.mrb[6].mxu0 %vm679_vm13, %v887_v30  ;;  %v2412_v30 = vld [vmem:[%s5386_s2 + $0x190] sm:$0xff] }
 0x191   :  { %3528 = vmatpush3.bf16.msra.mxu0 %v3527_v4  ;;  %2952 = vmatprep.mubr.msk.f32.mxu0 %vm3876_vm9, %v3874_v57  ;;  %v3578_v40 = vpack.c.bf16 %v2413_v35, %v2412_v30  ;;  %v3590_v4 = vpack.c.bf16 %v2421_v2, %v2420_v1  ;;  %v2453_v30 = vld [vmem:[%s5386_s2 + $0x250] sm:$0xff]  ;;  %v2454_v35 = vld [vmem:[%s5386_s2 + $0x258] sm:$0xff]  ;;  %v2489_v1 = vld [vmem:[%s5386_s2 + $0x2e8] sm:$0xff] }
 0x192   :  { %3529 = vmatprep.subr.bf16.mxu0 %v3875_v24  ;;  %v3638_v36 = vpack.c.bf16 %v2454_v35, %v2453_v30  ;;  %v3689_v2 = vpack.c.bf16 %v2489_v1, %v2488_v62  ;;  %v2372_v62 = vld [vmem:[%s5388_s4 + $0xd8] sm:$0xff]  ;;  %v890_v1 = vld [vmem:[#allocation2 + $0x4] sm:$0xf] }
 0x195   :  { %3531 = vmatpush3.bf16.msra.mxu0 %v3530_v7  ;;  %v3593_v7 = vpack.c.bf16 %v2423_v6, %v2422_v5  ;;  %v2509_v6 = vld [vmem:[%s5386_s2 + $0x300] sm:$0xff] }
 0x196   :  { %3532 = vmatprep.subr.bf16.mxu0 %v3875_v24 }
 0x199   :  { %3534 = vmatpush3.bf16.msra.mxu0 %v3533_v10  ;;  %v803_v10 = vld [vmem:[%s5388_s4 + $0x60] sm:$0xff] }
 0x19a   :  { %3535 = vmatprep.subr.bf16.mxu0 %v3875_v24 }
 0x19d   :  { %3537 = vmatpush3.bf16.msra.mxu0 %v3536_v13  ;;  %v3473_v13 = vpack.c.bf16 %v804_v11, %v803_v10  ;;  %v2512_v10 = vld [vmem:[%s5386_s2 + $0x318] sm:$0xff] }
 0x19e   :  { %3538 = vmatprep.subr.bf16.mxu0 %v3875_v24  ;;  %v3722_v11 = vpack.c.bf16 %v2512_v10, %v2511_v9 }
 0x1a1   :  { %3540 = vmatpush3.bf16.msra.mxu0 %v3539_v16  ;;  %v805_v16 = vld [vmem:[%s5388_s4 + $0x70] sm:$0xff] }
 0x1a2   :  { %3541 = vmatprep.subr.bf16.mxu0 %v3875_v24 }
 0x1a5   :  { %3543 = vmatpush3.bf16.msra.mxu0 %v3542_v61  ;;  %v3476_v61 = vpack.c.bf16 %v806_v17, %v805_v16  ;;  %v2517_v17 = vld [vmem:[%s5386_s2 + $0x340] sm:$0xff] }
 0x1a6   :  { %3544 = vmatprep.subr.bf16.mxu0 %v3875_v24 }
 0x1a9   :  { %3546 = vmatpush3.bf16.msra.mxu0 %v3545_v21  ;;  %v3626_v21 = vpack.c.bf16 %v2446_v20, %v2445_v19  ;;  %v2519_v19 = vld [vmem:[%s5386_s2 + $0x350] sm:$0xff]  ;;  %v2520_v20 = vld [vmem:[%s5386_s2 + $0x358] sm:$0xff] }
 0x1aa   :  { %3547 = vmatprep.subr.bf16.mxu0 %v3875_v24 }
 0x1ad   :  { %3549 = vmatpush3.bf16.msra.mxu0 %v3548_v23  ;;  %v3629_v23 = vpack.c.bf16 %v2448_v22, %v2447_v0  ;;  %v2521_v0 = vld [vmem:[%s5386_s2 + $0x360] sm:$0xff]  ;;  %v2522_v22 = vld [vmem:[%s5386_s2 + $0x368] sm:$0xff] }
 0x1ae   :  { %3574 = vmatprep.subr.bf16.mxu0 %v3875_v24 }
 0x1b0   :  { %2953 = vmatmul.mubr.msk.f32.vlgmr.msra.gmra.mrb[8].mxu0 %vm679_vm13, %v4525_v31  ;;  %v796_v31 = vld [vmem:[%s5388_s4 + $0x28] sm:$0xff] }
 0x1b1   :  { %3576 = vmatpush3.bf16.msra.mxu0 %v3575_v27  ;;  %3022 = vmatprep.mubr.msk.f32.mxu0 %vm3876_vm9, %v3874_v57  ;;  %v3461_v48 = vpack.c.bf16 %v796_v31, %v795_v44  ;;  %v2451_v27 = vld [vmem:[%s5386_s2 + $0x240] sm:$0xff]  ;;  %v2458_v44 = vld [vmem:[%s5386_s2 + $0x278] sm:$0xff] }
 0x1b2   :  { %3577 = vmatprep.subr.bf16.mxu0 %v3875_v24  ;;  %v3635_v29 = vpack.c.bf16 %v2452_v28, %v2451_v27  ;;  %v3644_v31 = vpack.c.bf16 %v2458_v44, %v2457_v41  ;;  %v4946_v27 = vsub.s32 0, %v4002_v26  ;;  %v681_v28 = vld [vmem:[#allocation2] sm:$0xf] }
 0x1b3   :  { %3462 = vmatpush3.bf16.msra.mxu1 %v3461_v48  ;;  %v3671_v48 = vpack.c.bf16 %v2477_v46, %v2476_v45  ;;  %v2361_v46 = vld [vmem:[%s5388_s4 + $0x80] sm:$0xff] }
 0x1b4   :  { %3463 = vmatprep.subr.bf16.mxu1 %v3875_v24  ;;  %v771_v30 = vrot.slane %v681_v28, %v4946_v27 }
 0x1b5   :  { %3579 = vmatpush3.bf16.msra.mxu0 %v3578_v40  ;;  %v3641_v40 = vpack.c.bf16 %v2456_v38, %v2455_v37 }
 0x1b6   :  { %3580 = vmatprep.subr.bf16.mxu0 %v3875_v24 }
 0x1b7   :  { %3465 = vmatpush3.bf16.msra.mxu1 %v3464_v55  ;;  %v3677_v55 = vpack.c.bf16 %v2481_v54, %v2480_v53  ;;  %v2364_v53 = vld [vmem:[%s5388_s4 + $0x98] sm:$0xff] }
 0x1b8   :  { %3466 = vmatprep.subr.bf16.mxu1 %v3875_v24 }
 0x1b9   :  { %3582 = vmatpush3.bf16.msra.mxu0 %v3581_v50  ;;  %v2478_v50 = vld [vmem:[%s5386_s2 + $0x290] sm:$0xff] }
 0x1ba   :  { %3583 = vmatprep.subr.bf16.mxu0 %v3875_v24  ;;  %v3674_v52 = vpack.c.bf16 %v2479_v51, %v2478_v50 }
 0x1bb   :  { %3468 = vmatpush3.bf16.msra.mxu1 %v3467_v58  ;;  %v2486_v58 = vld [vmem:[%s5386_s2 + $0x2d0] sm:$0xff] }
 0x1bc   :  { %3469 = vmatprep.subr.bf16.mxu1 %v3875_v24 }
 0x1bd   :  { %3585 = vmatpush3.bf16.msra.mxu0 %v3584_v42  ;;  %v2483_v42 = vld [vmem:[%s5386_s2 + $0x2b8] sm:$0xff] }
 0x1be   :  { %3586 = vmatprep.subr.bf16.mxu0 %v3875_v24 }
 0x1bf   :  { %3471 = vmatpush3.bf16.msra.mxu1 %v3470_v3  ;;  %v2490_v3 = vld [vmem:[%s5386_s2 + $0x2f0] sm:$0xff] }
 0x1c0   :  { %3472 = vmatprep.subr.bf16.mxu1 %v3875_v24 }
 0x1c1   :  { %3588 = vmatpush3.bf16.msra.mxu0 %v3587_v59  ;;  %v2487_v59 = vld [vmem:[%s5386_s2 + $0x2d8] sm:$0xff] }
 0x1c2   :  { %3589 = vmatprep.subr.bf16.mxu0 %v3875_v24  ;;  %v3686_v60 = vpack.c.bf16 %v2487_v59, %v2486_v58  ;;  %v2370_v58 = vld [vmem:[%s5388_s4 + $0xc8] sm:$0xff] }
 0x1c3   :  { %3474 = vmatpush3.bf16.msra.mxu1 %v3473_v13  ;;  %v2514_v13 = vld [vmem:[%s5386_s2 + $0x328] sm:$0xff] }
 0x1c4   :  { %3475 = vmatprep.subr.bf16.mxu1 %v3875_v24 }
 0x1c5   :  { %3591 = vmatpush3.bf16.msra.mxu0 %v3590_v4  ;;  %v2491_v4 = vld [vmem:[%s5386_s2 + $0x2f8] sm:$0xff] }
 0x1c6   :  { %3592 = vmatprep.subr.bf16.mxu0 %v3875_v24  ;;  %v3692_v5 = vpack.c.bf16 %v2491_v4, %v2490_v3  ;;  %v981_v3 = vrot.slane %v890_v1, %v4946_v27  ;;  %v2373_v4 = vld [vmem:[%s5388_s4 + $0xe0] sm:$0xff] }
 0x1c7   :  { %3477 = vmatpush3.bf16.msra.mxu1 %v3476_v61 }
 0x1c8   :  { %3502 = vmatprep.subr.bf16.mxu1 %v3875_v24 }
 0x1c9   :  { %3594 = vmatpush3.bf16.msra.mxu0 %v3593_v7  ;;  %v2510_v7 = vld [vmem:[%s5386_s2 + $0x308] sm:$0xff] }
 0x1ca   :  { %3595 = vmatprep.subr.bf16.mxu0 %v3875_v24  ;;  %v3719_v8 = vpack.c.bf16 %v2510_v7, %v2509_v6 }
 0x1cd   :  { %3597 = vmatpush3.bf16.msra.mxu0 %v3596_v12  ;;  %v2513_v12 = vld [vmem:[%s5386_s2 + $0x320] sm:$0xff] }
 0x1ce   :  { %3622 = vmatprep.subr.bf16.mxu0 %v3875_v24  ;;  %v3725_v14 = vpack.c.bf16 %v2514_v13, %v2513_v12  ;;  %v2376_v12 = vld [vmem:[%s5388_s4 + $0xf8] sm:$0xff] }
 0x1d0   :  { %3023 = vmatmul.mubr.msk.f32.vlgmr.msra.gmra.mrb[10].mxu0 %vm679_vm13, %v4528_v32  ;;  %v2449_v32 = vld [vmem:[%s5386_s2 + $0x230] sm:$0xff] }
 0x1d1   :  { %3624 = vmatpush3.bf16.msra.mxu0 %v3623_v18  ;;  %3092 = vmatprep.mubr.msk.f32.mxu0 %vm3876_vm9, %v3874_v57  ;;  %v3632_v63 = vpack.c.bf16 %v2450_v25, %v2449_v32  ;;  %v2518_v18 = vld [vmem:[%s5386_s2 + $0x348] sm:$0xff]  ;;  %v2523_v32 = vld [vmem:[%s5386_s2 + $0x370] sm:$0xff]  ;;  %v2524_v25 = vld [vmem:[%s5386_s2 + $0x378] sm:$0xff] }
 0x1d2   :  { %3625 = vmatprep.subr.bf16.mxu0 %v3875_v24  ;;  %v3731_v61 = vpack.c.bf16 %v2518_v18, %v2517_v17  ;;  %v2394_v17 = vld [vmem:[%s5388_s4 + $0x100] sm:$0xff]  ;;  %v2395_v18 = vld [vmem:[%s5388_s4 + $0x108] sm:$0xff] }
 0x1d5   :  { %3627 = vmatpush3.bf16.msra.mxu0 %v3626_v21  ;;  %v3734_v21 = vpack.c.bf16 %v2520_v20, %v2519_v19  ;;  %v3551_v19 = vpack.c.bf16 %v2395_v18, %v2394_v17  ;;  %v2439_v17 = vld [vmem:[%s5388_s4 + $0x1e0] sm:$0xff]  ;;  %v2440_v18 = vld [vmem:[%s5388_s4 + $0x1e8] sm:$0xff] }
 0x1d6   :  { %3628 = vmatprep.subr.bf16.mxu0 %v3875_v24 }
 0x1d9   :  { %3630 = vmatpush3.bf16.msra.mxu0 %v3629_v23  ;;  %v3737_v23 = vpack.c.bf16 %v2522_v22, %v2521_v0  ;;  %v2397_v0 = vld [vmem:[%s5388_s4 + $0x118] sm:$0xff] }
 0x1da   :  { %3631 = vmatprep.subr.bf16.mxu0 %v3875_v24 }
 0x1dd   :  { %3633 = vmatpush3.bf16.msra.mxu0 %v3632_v63  ;;  %v3740_v63 = vpack.c.bf16 %v2524_v25, %v2523_v32  ;;  %v2399_v32 = vld [vmem:[%s5388_s4 + $0x128] sm:$0xff] }
 0x1de   :  { %3634 = vmatprep.subr.bf16.mxu0 %v3875_v24 }
 0x1e1   :  { %3636 = vmatpush3.bf16.msra.mxu0 %v3635_v29  ;;  %v4949_v29 = vsub.s32 1, %v4002_v26 }
 0x1e2   :  { %3637 = vmatprep.subr.bf16.mxu0 %v3875_v24 }
 0x1e3   :  { %v776_v35 = vrot.slane %v681_v28, %v4949_v29  ;;  %v986_v6 = vrot.slane %v890_v1, %v4949_v29 }
 0x1e5   :  { %3639 = vmatpush3.bf16.msra.mxu0 %v3638_v36  ;;  %v4954_v36 = vsub.s32 2, %v4002_v26 }
 0x1e6   :  { %3640 = vmatprep.subr.bf16.mxu0 %v3875_v24 }
 0x1e7   :  { %v783_v44 = vrot.slane %v681_v28, %v4954_v36 }
 0x1e9   :  { %3642 = vmatpush3.bf16.msra.mxu0 %v3641_v40  ;;  %v4957_v40 = vsub.s32 3, %v4002_v26 }
 0x1ea   :  { %3643 = vmatprep.subr.bf16.mxu0 %v3875_v24 }
 0x1eb   :  { %v788_v45 = vrot.slane %v681_v28, %v4957_v40  ;;  %v2401_v28 = vld [vmem:[%s5388_s4 + $0x138] sm:$0xff] }
 0x1ed   :  { %3645 = vmatpush3.bf16.msra.mxu0 %v3644_v31 }
 0x1ee   :  { %3670 = vmatprep.subr.bf16.mxu0 %v3875_v24 }
 0x1f0   :  { %3093 = vmatmul.mubr.msk.f32.vlgmr.msra.gmra.mrb[12].mxu0 %vm679_vm13, %v4535_v39  ;;  %v2482_v39 = vld [vmem:[%s5386_s2 + $0x2b0] sm:$0xff] }
 0x1f1   :  { %3672 = vmatpush3.bf16.msra.mxu0 %v3671_v48  ;;  %3162 = vmatprep.mubr.msk.f32.mxu0 %vm3876_vm9, %v3874_v57  ;;  %v3680_v33 = vpack.c.bf16 %v2483_v42, %v2482_v39  ;;  %v2362_v48 = vld [vmem:[%s5388_s4 + $0x88] sm:$0xff] }
 0x1f2   :  { %3673 = vmatprep.subr.bf16.mxu0 %v3875_v24  ;;  %v3503_v51 = vpack.c.bf16 %v2362_v48, %v2361_v46  ;;  %v2366_v39 = vld [vmem:[%s5388_s4 + $0xa8] sm:$0xff]  ;;  %v2406_v46 = vld [vmem:[%s5388_s4 + $0x160] sm:$0xff] }
 0x1f3   :  { %v2407_v48 = vld [vmem:[%s5388_s4 + $0x168] sm:$0xff] }
 0x1f5   :  { %3675 = vmatpush3.bf16.msra.mxu0 %v3674_v52  ;;  %v2363_v52 = vld [vmem:[%s5388_s4 + $0x90] sm:$0xff] }
 0x1f6   :  { %3676 = vmatprep.subr.bf16.mxu0 %v3875_v24  ;;  %v3506_v54 = vpack.c.bf16 %v2364_v53, %v2363_v52 }
 0x1f9   :  { %3678 = vmatpush3.bf16.msra.mxu0 %v3677_v55  ;;  %v2365_v55 = vld [vmem:[%s5388_s4 + $0xa0] sm:$0xff] }
 0x1fa   :  { %3679 = vmatprep.subr.bf16.mxu0 %v3875_v24  ;;  %v3509_v42 = vpack.c.bf16 %v2366_v39, %v2365_v55  ;;  %v2409_v55 = vld [vmem:[%s5388_s4 + $0x178] sm:$0xff] }
 0x1fd   :  { %3681 = vmatpush3.bf16.msra.mxu0 %v3680_v33  ;;  %v2367_v33 = vld [vmem:[%s5388_s4 + $0xb0] sm:$0xff] }
 0x1fe   :  { %3682 = vmatprep.subr.bf16.mxu0 %v3875_v24  ;;  %v3512_v43 = vpack.c.bf16 %v2368_v34, %v2367_v33 }
 0x201   :  { %3684 = vmatpush3.bf16.msra.mxu0 %v3683_v56  ;;  %v2369_v56 = vld [vmem:[%s5388_s4 + $0xc0] sm:$0xff] }
 0x202   :  { %3685 = vmatprep.subr.bf16.mxu0 %v3875_v24  ;;  %v3515_v59 = vpack.c.bf16 %v2370_v58, %v2369_v56  ;;  %v2427_v56 = vld [vmem:[%s5388_s4 + $0x180] sm:$0xff]  ;;  %v2428_v58 = vld [vmem:[%s5388_s4 + $0x188] sm:$0xff] }
 0x205   :  { %3687 = vmatpush3.bf16.msra.mxu0 %v3686_v60  ;;  %v2371_v60 = vld [vmem:[%s5388_s4 + $0xd0] sm:$0xff] }
 0x206   :  { %3688 = vmatprep.subr.bf16.mxu0 %v3875_v24 }
 0x209   :  { %3690 = vmatpush3.bf16.msra.mxu0 %v3689_v2  ;;  %v3518_v2 = vpack.c.bf16 %v2372_v62, %v2371_v60  ;;  %v3599_v60 = vpack.c.bf16 %v2428_v58, %v2427_v56  ;;  %v2472_v56 = vld [vmem:[%s5388_s4 + $0x260] sm:$0xff]  ;;  %v2473_v58 = vld [vmem:[%s5388_s4 + $0x268] sm:$0xff] }
 0x20a   :  { %3691 = vmatprep.subr.bf16.mxu0 %v3875_v24 }
 0x20d   :  { %3693 = vmatpush3.bf16.msra.mxu0 %v3692_v5  ;;  %v2374_v5 = vld [vmem:[%s5388_s4 + $0xe8] sm:$0xff] }
 0x20e   :  { %3718 = vmatprep.subr.bf16.mxu0 %v3875_v24 }
 0x210   :  { %3163 = vmatmul.mubr.msk.f32.vlgmr.msra.gmra.mrb[14].mxu0 %vm679_vm13, %v4546_v47  ;;  %v2515_v47 = vld [vmem:[%s5386_s2 + $0x330] sm:$0xff] }
 0x211   :  { %3720 = vmatpush3.bf16.msra.mxu0 %v3719_v8  ;;  %3232 = vmatprep.mubr.msk.f32.mxu0 %vm3876_vm9, %v3874_v57  ;;  %v3728_v16 = vpack.c.bf16 %v2516_v15, %v2515_v47  ;;  %v3521_v8 = vpack.c.bf16 %v2374_v5, %v2373_v4  ;;  %v2431_v4 = vld [vmem:[%s5388_s4 + $0x1a0] sm:$0xff]  ;;  %v2432_v5 = vld [vmem:[%s5388_s4 + $0x1a8] sm:$0xff] }
 0x212   :  { %3721 = vmatprep.subr.bf16.mxu0 %v3875_v24 }
 0x215   :  { %3723 = vmatpush3.bf16.msra.mxu0 %v3722_v11  ;;  %v2375_v11 = vld [vmem:[%s5388_s4 + $0xf0] sm:$0xff] }
 0x216   :  { %3724 = vmatprep.subr.bf16.mxu0 %v3875_v24  ;;  %v3524_v47 = vpack.c.bf16 %v2376_v12, %v2375_v11  ;;  %v2436_v11 = vld [vmem:[%s5388_s4 + $0x1c8] sm:$0xff] }
 0x219   :  { %3726 = vmatpush3.bf16.msra.mxu0 %v3725_v14  ;;  %v994_v14 = vrot.slane %v890_v1, %v4954_v36 }
 0x21a   :  { %3727 = vmatprep.subr.bf16.mxu0 %v3875_v24 }
 0x21d   :  { %3729 = vmatpush3.bf16.msra.mxu0 %v3728_v16  ;;  %v999_v16 = vrot.slane %v890_v1, %v4957_v40  ;;  %v2429_v1 = vld [vmem:[%s5388_s4 + $0x190] sm:$0xff] }
 0x21e   :  { %3730 = vmatprep.subr.bf16.mxu0 %v3875_v24 }
 0x221   :  { %3732 = vmatpush3.bf16.msra.mxu0 %v3731_v61 }
 0x222   :  { %3733 = vmatprep.subr.bf16.mxu0 %v3875_v24 }
 0x225   :  { %3735 = vmatpush3.bf16.msra.mxu0 %v3734_v21  ;;  %v2396_v21 = vld [vmem:[%s5388_s4 + $0x110] sm:$0xff] }
 0x226   :  { %3736 = vmatprep.subr.bf16.mxu0 %v3875_v24  ;;  %v3554_v22 = vpack.c.bf16 %v2397_v0, %v2396_v21 }
 0x229   :  { %3738 = vmatpush3.bf16.msra.mxu0 %v3737_v23  ;;  %v2398_v23 = vld [vmem:[%s5388_s4 + $0x120] sm:$0xff] }
 0x22a   :  { %3739 = vmatprep.subr.bf16.mxu0 %v3875_v24  ;;  %v3557_v25 = vpack.c.bf16 %v2399_v32, %v2398_v23  ;;  %v2442_v23 = vld [vmem:[%s5388_s4 + $0x1f8] sm:$0xff] }
 0x22d   :  { %3741 = vmatpush3.bf16.msra.mxu0 %v3740_v63  ;;  %v2400_v63 = vld [vmem:[%s5388_s4 + $0x130] sm:$0xff] }
 0x230   :  { %3233 = vmatmul.mubr.msk.f32.vlgmr.msra.gmra.mrb[16].mxu0 %vm679_vm13, %v4550_v49 }
 0x243   :  { %v764_v37 = vpop.f32.mrb[4].mxu0 }
 0x244   :  { %v772_v38 = vmul.f32 %v771_v30, %v764_v37  ;;  %v2814_v49 = vpop.f32.mrb[5].mxu0  ;;  %v3560_v30 = vpack.c.bf16 %v2401_v28, %v2400_v63  ;;  %v2403_v37 = vld [vmem:[%s5388_s4 + $0x148] sm:$0xff] }
 0x245   :  { %v2404_v49 = vld [vmem:[%s5388_s4 + $0x150] sm:$0xff] }
 0x246   :  { %v777_v41 = vadd.f32 %v776_v35, %v772_v38  ;;  %v2402_v35 = vld [vmem:[%s5388_s4 + $0x140] sm:$0xff] }
 0x247   :  { %v3563_v38 = vpack.c.bf16 %v2403_v37, %v2402_v35  ;;  %v2460_v35 = vld [vmem:[%s5388_s4 + $0x200] sm:$0xff]  ;;  %v2461_v37 = vld [vmem:[%s5388_s4 + $0x208] sm:$0xff] }
 0x248   :  { %v778_v31 = vmax.f32 %v777_v41, 0.0  ;;  %v2405_v41 = vld [vmem:[%s5388_s4 + $0x158] sm:$0xff] }
 0x24a   :  { %779 = vst [vmem:[#allocation5] sm:$0xff] %v778_v31  ;;  %v784_v50 = vmul.f32 %v783_v44, %v778_v31  ;;  %v1103_v44 = vld [vmem:[#allocation2 + $0x8] sm:$0xf]  ;;  %v3566_v31 = vpack.c.bf16 %v2405_v41, %v2404_v49  ;;  %v3647_v49 = vpack.c.bf16 %v2461_v37, %v2460_v35  ;;  %v2505_v35 = vld [vmem:[%s5388_s4 + $0x2e0] sm:$0xff] }
 0x24b   :  { %v2506_v37 = vld [vmem:[%s5388_s4 + $0x2e8] sm:$0xff] }
 0x24c   :  { %v789_v26 = vadd.f32 %v788_v45, %v784_v50  ;;  %v1194_v45 = vrot.slane %v1103_v44, %v4946_v27  ;;  %v1199_v50 = vrot.slane %v1103_v44, %v4949_v29 }
 0x24e   :  { %790 = vst [vmem:[#allocation6] sm:$0xff] %v789_v26  ;;  %2848 = vmatmul.mubr.f32.vlgmr.msra.gmra.mrb[4].mxu1 %v789_v26  ;;  %v3569_v26 = vpack.c.bf16 %v2407_v48, %v2406_v46  ;;  %v2464_v46 = vld [vmem:[%s5388_s4 + $0x220] sm:$0xff]  ;;  %v2465_v48 = vld [vmem:[%s5388_s4 + $0x228] sm:$0xff] }
 0x24f   :  { %3504 = vmatpush3.bf16.msra.mxu1 %v3503_v51  ;;  %2917 = vmatprep.mubr.msk.f32.mxu1 %vm3876_vm9, %v3874_v57 }
 0x250   :  { %3505 = vmatprep.subr.bf16.mxu1 %v3875_v24 }
 0x253   :  { %3507 = vmatpush3.bf16.msra.mxu1 %v3506_v54  ;;  %v2408_v54 = vld [vmem:[%s5388_s4 + $0x170] sm:$0xff] }
 0x254   :  { %3508 = vmatprep.subr.bf16.mxu1 %v3875_v24  ;;  %v3572_v33 = vpack.c.bf16 %v2409_v55, %v2408_v54  ;;  %v2469_v54 = vld [vmem:[%s5388_s4 + $0x248] sm:$0xff] }
 0x257   :  { %3510 = vmatpush3.bf16.msra.mxu1 %v3509_v42  ;;  %v1207_v42 = vrot.slane %v1103_v44, %v4954_v36 }
 0x258   :  { %3511 = vmatprep.subr.bf16.mxu1 %v3875_v24 }
 0x25b   :  { %3513 = vmatpush3.bf16.msra.mxu1 %v3512_v43  ;;  %v1212_v43 = vrot.slane %v1103_v44, %v4957_v40  ;;  %v2462_v44 = vld [vmem:[%s5388_s4 + $0x210] sm:$0xff] }
 0x25c   :  { %3514 = vmatprep.subr.bf16.mxu1 %v3875_v24 }
 0x25f   :  { %3516 = vmatpush3.bf16.msra.mxu1 %v3515_v59 }
 0x260   :  { %3517 = vmatprep.subr.bf16.mxu1 %v3875_v24 }
 0x263   :  { %v974_v7 = vpop.f32.mrb[6].mxu0  ;;  %3519 = vmatpush3.bf16.msra.mxu1 %v3518_v2  ;;  %v2430_v2 = vld [vmem:[%s5388_s4 + $0x198] sm:$0xff] }
 0x264   :  { %v982_v9 = vmul.f32 %v981_v3, %v974_v7  ;;  %v2884_v10 = vpop.f32.mrb[7].mxu0  ;;  %3520 = vmatprep.subr.bf16.mxu1 %v3875_v24  ;;  %v3602_v3 = vpack.c.bf16 %v2430_v2, %v2429_v1  ;;  %v2433_v7 = vld [vmem:[%s5388_s4 + $0x1b0] sm:$0xff] }
 0x265   :  { %v2435_v10 = vld [vmem:[%s5388_s4 + $0x1c0] sm:$0xff] }
 0x266   :  { %v987_v13 = vadd.f32 %v986_v6, %v982_v9  ;;  %v3605_v6 = vpack.c.bf16 %v2432_v5, %v2431_v4  ;;  %v3611_v12 = vpack.c.bf16 %v2436_v11, %v2435_v10  ;;  %v2475_v4 = vld [vmem:[%s5388_s4 + $0x278] sm:$0xff]  ;;  %v2493_v10 = vld [vmem:[%s5388_s4 + $0x280] sm:$0xff]  ;;  %v2494_v11 = vld [vmem:[%s5388_s4 + $0x288] sm:$0xff] }
 0x267   :  { %3522 = vmatpush3.bf16.msra.mxu1 %v3521_v8  ;;  %v2434_v8 = vld [vmem:[%s5388_s4 + $0x1b8] sm:$0xff] }
 0x268   :  { %v988_v15 = vmax.f32 %v987_v13, 0.0  ;;  %3523 = vmatprep.subr.bf16.mxu1 %v3875_v24  ;;  %v3608_v9 = vpack.c.bf16 %v2434_v8, %v2433_v7  ;;  %v2437_v13 = vld [vmem:[%s5388_s4 + $0x1d0] sm:$0xff] }
 0x26a   :  { %990 = vst [vmem:[#allocation5 + $0x8] sm:$0xff] %v988_v15  ;;  %v995_v61 = vmul.f32 %v994_v14, %v988_v15  ;;  %v2438_v14 = vld [vmem:[%s5388_s4 + $0x1d8] sm:$0xff] }
 0x26b   :  { %3525 = vmatpush3.bf16.msra.mxu1 %v3524_v47  ;;  %v1316_v47 = vld [vmem:[#allocation2 + $0xc] sm:$0xf]  ;;  %v3614_v15 = vpack.c.bf16 %v2438_v14, %v2437_v13  ;;  %v3695_v13 = vpack.c.bf16 %v2494_v11, %v2493_v10 }
 0x26c   :  { %v1000_v20 = vadd.f32 %v999_v16, %v995_v61  ;;  %3550 = vmatprep.subr.bf16.mxu1 %v3875_v24  ;;  %v1407_v16 = vrot.slane %v1316_v47, %v4946_v27  ;;  %v1412_v61 = vrot.slane %v1316_v47, %v4949_v29  ;;  %v2539_v10 = vld [vmem:[%s5388_s4 + $0x368] sm:$0xff] }
 0x26e   :  { %1002 = vst [vmem:[#allocation6 + $0x8] sm:$0xff] %v1000_v20  ;;  %2918 = vmatmul.mubr.f32.vlgmr.msra.gmra.mrb[6].mxu1 %v1000_v20  ;;  %v3617_v20 = vpack.c.bf16 %v2440_v18, %v2439_v17  ;;  %v2497_v17 = vld [vmem:[%s5388_s4 + $0x2a0] sm:$0xff]  ;;  %v2498_v18 = vld [vmem:[%s5388_s4 + $0x2a8] sm:$0xff] }
 0x26f   :  { %3552 = vmatpush3.bf16.msra.mxu1 %v3551_v19  ;;  %2987 = vmatprep.mubr.msk.f32.mxu1 %vm3876_vm9, %v3874_v57 }
 0x270   :  { %3553 = vmatprep.subr.bf16.mxu1 %v3875_v24 }
 0x273   :  { %3555 = vmatpush3.bf16.msra.mxu1 %v3554_v22  ;;  %v2441_v22 = vld [vmem:[%s5388_s4 + $0x1f0] sm:$0xff] }
 0x274   :  { %3556 = vmatprep.subr.bf16.mxu1 %v3875_v24  ;;  %v3620_v63 = vpack.c.bf16 %v2442_v23, %v2441_v22  ;;  %v2502_v22 = vld [vmem:[%s5388_s4 + $0x2c8] sm:$0xff] }
 0x277   :  { %3558 = vmatpush3.bf16.msra.mxu1 %v3557_v25  ;;  %v1420_v25 = vrot.slane %v1316_v47, %v4954_v36 }
 0x278   :  { %3559 = vmatprep.subr.bf16.mxu1 %v3875_v24 }
 0x27b   :  { %3561 = vmatpush3.bf16.msra.mxu1 %v3560_v30  ;;  %v1425_v30 = vrot.slane %v1316_v47, %v4957_v40  ;;  %v2495_v47 = vld [vmem:[%s5388_s4 + $0x290] sm:$0xff] }
 0x27c   :  { %3562 = vmatprep.subr.bf16.mxu1 %v3875_v24 }
 0x27f   :  { %3564 = vmatpush3.bf16.msra.mxu1 %v3563_v38 }
 0x280   :  { %3565 = vmatprep.subr.bf16.mxu1 %v3875_v24 }
 0x283   :  { %v1187_v51 = vpop.f32.mrb[8].mxu0  ;;  %3567 = vmatpush3.bf16.msra.mxu1 %v3566_v31  ;;  %v2463_v31 = vld [vmem:[%s5388_s4 + $0x218] sm:$0xff] }
 0x284   :  { %v1195_v52 = vmul.f32 %v1194_v45, %v1187_v51  ;;  %v2954_v53 = vpop.f32.mrb[9].mxu0  ;;  %3568 = vmatprep.subr.bf16.mxu1 %v3875_v24  ;;  %v3650_v45 = vpack.c.bf16 %v2463_v31, %v2462_v44  ;;  %v2466_v51 = vld [vmem:[%s5388_s4 + $0x230] sm:$0xff] }
 0x285   :  { %v2468_v53 = vld [vmem:[%s5388_s4 + $0x240] sm:$0xff] }
 0x286   :  { %v1200_v39 = vadd.f32 %v1199_v50, %v1195_v52  ;;  %v3653_v50 = vpack.c.bf16 %v2465_v48, %v2464_v46  ;;  %v3659_v55 = vpack.c.bf16 %v2469_v54, %v2468_v53  ;;  %v2508_v46 = vld [vmem:[%s5388_s4 + $0x2f8] sm:$0xff]  ;;  %v2526_v53 = vld [vmem:[%s5388_s4 + $0x300] sm:$0xff]  ;;  %v2527_v54 = vld [vmem:[%s5388_s4 + $0x308] sm:$0xff] }
 0x287   :  { %3570 = vmatpush3.bf16.msra.mxu1 %v3569_v26  ;;  %v2467_v26 = vld [vmem:[%s5388_s4 + $0x238] sm:$0xff] }
 0x288   :  { %v1201_v34 = vmax.f32 %v1200_v39, 0.0  ;;  %3571 = vmatprep.subr.bf16.mxu1 %v3875_v24  ;;  %v3656_v52 = vpack.c.bf16 %v2467_v26, %v2466_v51  ;;  %v2470_v39 = vld [vmem:[%s5388_s4 + $0x250] sm:$0xff] }
 0x28a   :  { %1203 = vst [vmem:[#allocation5 + $0x10] sm:$0xff] %v1201_v34  ;;  %v1208_v59 = vmul.f32 %v1207_v42, %v1201_v34  ;;  %v2471_v42 = vld [vmem:[%s5388_s4 + $0x258] sm:$0xff] }
 0x28b   :  { %3573 = vmatpush3.bf16.msra.mxu1 %v3572_v33  ;;  %v1531_v33 = vld [vmem:[#allocation2 + $0x10] sm:$0xf]  ;;  %v3662_v34 = vpack.c.bf16 %v2471_v42, %v2470_v39  ;;  %v3743_v39 = vpack.c.bf16 %v2527_v54, %v2526_v53 }
 0x28c   :  { %v1213_v62 = vadd.f32 %v1212_v43, %v1208_v59  ;;  %3598 = vmatprep.subr.bf16.mxu1 %v3875_v24  ;;  %v1622_v43 = vrot.slane %v1531_v33, %v4946_v27  ;;  %v1627_v59 = vrot.slane %v1531_v33, %v4949_v29 }
 0x28e   :  { %1215 = vst [vmem:[#allocation6 + $0x10] sm:$0xff] %v1213_v62  ;;  %2988 = vmatmul.mubr.f32.vlgmr.msra.gmra.mrb[8].mxu1 %v1213_v62  ;;  %v3665_v62 = vpack.c.bf16 %v2473_v58, %v2472_v56  ;;  %v2530_v56 = vld [vmem:[%s5388_s4 + $0x320] sm:$0xff]  ;;  %v2531_v58 = vld [vmem:[%s5388_s4 + $0x328] sm:$0xff] }
 0x28f   :  { %3600 = vmatpush3.bf16.msra.mxu1 %v3599_v60  ;;  %3057 = vmatprep.mubr.msk.f32.mxu1 %vm3876_vm9, %v3874_v57 }
 0x290   :  { %3601 = vmatprep.subr.bf16.mxu1 %v3875_v24 }
 0x293   :  { %3603 = vmatpush3.bf16.msra.mxu1 %v3602_v3  ;;  %v2474_v3 = vld [vmem:[%s5388_s4 + $0x270] sm:$0xff] }
 0x294   :  { %3604 = vmatprep.subr.bf16.mxu1 %v3875_v24  ;;  %v3668_v7 = vpack.c.bf16 %v2475_v4, %v2474_v3  ;;  %v2536_v4 = vld [vmem:[%s5388_s4 + $0x350] sm:$0xff] }
 0x297   :  { %3606 = vmatpush3.bf16.msra.mxu1 %v3605_v6  ;;  %v1635_v6 = vrot.slane %v1531_v33, %v4954_v36 }
 0x298   :  { %3607 = vmatprep.subr.bf16.mxu1 %v3875_v24 }
 0x29b   :  { %3609 = vmatpush3.bf16.msra.mxu1 %v3608_v9  ;;  %v1640_v9 = vrot.slane %v1531_v33, %v4957_v40  ;;  %v2528_v33 = vld [vmem:[%s5388_s4 + $0x310] sm:$0xff] }
 0x29c   :  { %3610 = vmatprep.subr.bf16.mxu1 %v3875_v24 }
 0x29f   :  { %3612 = vmatpush3.bf16.msra.mxu1 %v3611_v12 }
 0x2a0   :  { %3613 = vmatprep.subr.bf16.mxu1 %v3875_v24 }
 0x2a3   :  { %v1400_v19 = vpop.f32.mrb[10].mxu0  ;;  %3615 = vmatpush3.bf16.msra.mxu1 %v3614_v15  ;;  %v2496_v15 = vld [vmem:[%s5388_s4 + $0x298] sm:$0xff] }
 0x2a4   :  { %v1408_v21 = vmul.f32 %v1407_v16, %v1400_v19  ;;  %v3024_v0 = vpop.f32.mrb[11].mxu0  ;;  %3616 = vmatprep.subr.bf16.mxu1 %v3875_v24  ;;  %v3698_v16 = vpack.c.bf16 %v2496_v15, %v2495_v47  ;;  %v2499_v19 = vld [vmem:[%s5388_s4 + $0x2b0] sm:$0xff]  ;;  %v2541_v15 = vld [vmem:[%s5388_s4 + $0x378] sm:$0xff] }
 0x2a5   :  { %v2501_v0 = vld [vmem:[%s5388_s4 + $0x2c0] sm:$0xff] }
 0x2a6   :  { %v1413_v32 = vadd.f32 %v1412_v61, %v1408_v21  ;;  %v3701_v61 = vpack.c.bf16 %v2498_v18, %v2497_v17  ;;  %v3707_v23 = vpack.c.bf16 %v2502_v22, %v2501_v0 }
 0x2a7   :  { %3618 = vmatpush3.bf16.msra.mxu1 %v3617_v20  ;;  %v2500_v20 = vld [vmem:[%s5388_s4 + $0x2b8] sm:$0xff] }
 0x2a8   :  { %v1414_v28 = vmax.f32 %v1413_v32, 0.0  ;;  %3619 = vmatprep.subr.bf16.mxu1 %v3875_v24  ;;  %v3704_v21 = vpack.c.bf16 %v2500_v20, %v2499_v19  ;;  %v2503_v32 = vld [vmem:[%s5388_s4 + $0x2d0] sm:$0xff] }
 0x2aa   :  { %1416 = vst [vmem:[#allocation5 + $0x18] sm:$0xff] %v1414_v28  ;;  %v1421_v38 = vmul.f32 %v1420_v25, %v1414_v28  ;;  %v2504_v25 = vld [vmem:[%s5388_s4 + $0x2d8] sm:$0xff] }
 0x2ab   :  { %3621 = vmatpush3.bf16.msra.mxu1 %v3620_v63  ;;  %v1746_v63 = vld [vmem:[#allocation2 + $0x14] sm:$0xf]  ;;  %v3710_v28 = vpack.c.bf16 %v2504_v25, %v2503_v32 }
 0x2ac   :  { %v1426_v41 = vadd.f32 %v1425_v30, %v1421_v38  ;;  %3646 = vmatprep.subr.bf16.mxu1 %v3875_v24  ;;  %v1837_v30 = vrot.slane %v1746_v63, %v4946_v27  ;;  %v1842_v38 = vrot.slane %v1746_v63, %v4949_v29 }
 0x2ae   :  { %1428 = vst [vmem:[#allocation6 + $0x18] sm:$0xff] %v1426_v41  ;;  %3058 = vmatmul.mubr.f32.vlgmr.msra.gmra.mrb[10].mxu1 %v1426_v41  ;;  %v3713_v41 = vpack.c.bf16 %v2506_v37, %v2505_v35 }
 0x2af   :  { %3648 = vmatpush3.bf16.msra.mxu1 %v3647_v49  ;;  %3127 = vmatprep.mubr.msk.f32.mxu1 %vm3876_vm9, %v3874_v57 }
 0x2b0   :  { %3649 = vmatprep.subr.bf16.mxu1 %v3875_v24 }
 0x2b3   :  { %3651 = vmatpush3.bf16.msra.mxu1 %v3650_v45  ;;  %v2507_v45 = vld [vmem:[%s5388_s4 + $0x2f0] sm:$0xff] }
 0x2b4   :  { %3652 = vmatprep.subr.bf16.mxu1 %v3875_v24  ;;  %v3716_v51 = vpack.c.bf16 %v2508_v46, %v2507_v45 }
 0x2b7   :  { %3654 = vmatpush3.bf16.msra.mxu1 %v3653_v50  ;;  %v1850_v50 = vrot.slane %v1746_v63, %v4954_v36 }
 0x2b8   :  { %3655 = vmatprep.subr.bf16.mxu1 %v3875_v24 }
 0x2bb   :  { %3657 = vmatpush3.bf16.msra.mxu1 %v3656_v52  ;;  %v1855_v52 = vrot.slane %v1746_v63, %v4957_v40 }
 0x2bc   :  { %3658 = vmatprep.subr.bf16.mxu1 %v3875_v24 }
 0x2bf   :  { %3660 = vmatpush3.bf16.msra.mxu1 %v3659_v55 }
 0x2c0   :  { %3661 = vmatprep.subr.bf16.mxu1 %v3875_v24 }
 0x2c3   :  { %v1615_v60 = vpop.f32.mrb[12].mxu0  ;;  %3663 = vmatpush3.bf16.msra.mxu1 %v3662_v34  ;;  %v2529_v34 = vld [vmem:[%s5388_s4 + $0x318] sm:$0xff] }
 0x2c4   :  { %v1623_v1 = vmul.f32 %v1622_v43, %v1615_v60  ;;  %v3094_v2 = vpop.f32.mrb[13].mxu0  ;;  %3664 = vmatprep.subr.bf16.mxu1 %v3875_v24  ;;  %v3746_v43 = vpack.c.bf16 %v2529_v34, %v2528_v33  ;;  %v2532_v60 = vld [vmem:[%s5388_s4 + $0x330] sm:$0xff] }
 0x2c5   :  { %v2535_v2 = vld [vmem:[%s5388_s4 + $0x348] sm:$0xff] }
 0x2c6   :  { %v1628_v5 = vadd.f32 %v1627_v59, %v1623_v1  ;;  %v3749_v59 = vpack.c.bf16 %v2531_v58, %v2530_v56  ;;  %v2534_v1 = vld [vmem:[%s5388_s4 + $0x340] sm:$0xff] }
 0x2c7   :  { %3666 = vmatpush3.bf16.msra.mxu1 %v3665_v62  ;;  %v3755_v3 = vpack.c.bf16 %v2535_v2, %v2534_v1 }
 0x2c8   :  { %v1629_v8 = vmax.f32 %v1628_v5, 0.0  ;;  %3667 = vmatprep.subr.bf16.mxu1 %v3875_v24  ;;  %v2537_v5 = vld [vmem:[%s5388_s4 + $0x358] sm:$0xff] }
 0x2ca   :  { %1631 = vst [vmem:[#allocation5 + $0x20] sm:$0xff] %v1629_v8  ;;  %v1636_v12 = vmul.f32 %v1635_v6, %v1629_v8  ;;  %v1961_v6 = vld [vmem:[#allocation2 + $0x18] sm:$0xf] }
 0x2cb   :  { %3669 = vmatpush3.bf16.msra.mxu1 %v3668_v7  ;;  %v3758_v7 = vpack.c.bf16 %v2537_v5, %v2536_v4  ;;  %v2052_v8 = vrot.slane %v1961_v6, %v4946_v27  ;;  %v2057_v11 = vrot.slane %v1961_v6, %v4949_v29  ;;  %v2540_v27 = vld [vmem:[%s5388_s4 + $0x370] sm:$0xff]  ;;  %v2065_v17 = vrot.slane %v1961_v6, %v4954_v36 }
 0x2cc   :  { %v1641_v14 = vadd.f32 %v1640_v9, %v1636_v12  ;;  %3694 = vmatprep.subr.bf16.mxu1 %v3875_v24  ;;  %v2538_v9 = vld [vmem:[%s5388_s4 + $0x360] sm:$0xff]  ;;  %v3764_v29 = vpack.c.bf16 %v2541_v15, %v2540_v27 }
 0x2ce   :  { %1643 = vst [vmem:[#allocation6 + $0x20] sm:$0xff] %v1641_v14  ;;  %3128 = vmatmul.mubr.f32.vlgmr.msra.gmra.mrb[12].mxu1 %v1641_v14 }
 0x2cf   :  { %3696 = vmatpush3.bf16.msra.mxu1 %v3695_v13  ;;  %3197 = vmatprep.mubr.msk.f32.mxu1 %vm3876_vm9, %v3874_v57  ;;  %v3761_v13 = vpack.c.bf16 %v2539_v10, %v2538_v9 }
 0x2d0   :  { %3697 = vmatprep.subr.bf16.mxu1 %v3875_v24 }
 0x2d3   :  { %3699 = vmatpush3.bf16.msra.mxu1 %v3698_v16 }
 0x2d4   :  { %3700 = vmatprep.subr.bf16.mxu1 %v3875_v24 }
 0x2d7   :  { %3702 = vmatpush3.bf16.msra.mxu1 %v3701_v61  ;;  %v2070_v61 = vrot.slane %v1961_v6, %v4957_v40 }
 0x2d8   :  { %3703 = vmatprep.subr.bf16.mxu1 %v3875_v24 }
 0x2db   :  { %3705 = vmatpush3.bf16.msra.mxu1 %v3704_v21 }
 0x2dc   :  { %3706 = vmatprep.subr.bf16.mxu1 %v3875_v24 }
 0x2df   :  { %3708 = vmatpush3.bf16.msra.mxu1 %v3707_v23 }
 0x2e0   :  { %3709 = vmatprep.subr.bf16.mxu1 %v3875_v24 }
 0x2e3   :  { %v1830_v49 = vpop.f32.mrb[14].mxu0  ;;  %3711 = vmatpush3.bf16.msra.mxu1 %v3710_v28 }
 0x2e4   :  { %v1838_v44 = vmul.f32 %v1837_v30, %v1830_v49  ;;  %v3164_v31 = vpop.f32.mrb[15].mxu0  ;;  %3712 = vmatprep.subr.bf16.mxu1 %v3875_v24 }
 0x2e6   :  { %v1843_v48 = vadd.f32 %v1842_v38, %v1838_v44 }
 0x2e7   :  { %3714 = vmatpush3.bf16.msra.mxu1 %v3713_v41 }
 0x2e8   :  { %v1844_v26 = vmax.f32 %v1843_v48, 0.0  ;;  %3715 = vmatprep.subr.bf16.mxu1 %v3875_v24 }
 0x2ea   :  { %1846 = vst [vmem:[#allocation5 + $0x28] sm:$0xff] %v1844_v26  ;;  %v1851_v55 = vmul.f32 %v1850_v50, %v1844_v26 }
 0x2eb   :  { %3717 = vmatpush3.bf16.msra.mxu1 %v3716_v51 }
 0x2ec   :  { %v1856_v42 = vadd.f32 %v1855_v52, %v1851_v55  ;;  %3742 = vmatprep.subr.bf16.mxu1 %v3875_v24 }
 0x2ee   :  { %1858 = vst [vmem:[#allocation6 + $0x28] sm:$0xff] %v1856_v42  ;;  %3198 = vmatmul.mubr.f32.vlgmr.msra.gmra.mrb[14].mxu1 %v1856_v42 }
 0x2ef   :  { %3744 = vmatpush3.bf16.msra.mxu1 %v3743_v39  ;;  %3267 = vmatprep.mubr.msk.f32.mxu1 %vm3876_vm9, %v3874_v57  ;;  %v2533_v57 = vld [vmem:[%s5388_s4 + $0x338] sm:$0xff]  ;;  %s3877_s4 = smov [#allocation6]  }
 0x2f0   :  { %3745 = vmatprep.subr.bf16.mxu1 %v3875_v24  ;;  %v3752_v62 = vpack.c.bf16 %v2533_v57, %v2532_v60  ;;  %s2180_s23 = sshll.u32 %s3877_s4, 4  ;;  %s2181_s23 = int_to_ptr.vmem [resolvable:$true] %s2180_s23 }
 0x2f1   :  { %s3799_s26 = scalar_lea.vmem %s2181_s23, 896  ;;  %p3804_p9 = scmp.lt.s32.totalorder %s2181_s23, %s2181_s23 }
 0x2f2   :  { %p3800_p8 = scmp.ne.s32.totalorder %s2181_s23, %s3799_s26  ;;  %p3805_p10 = scmp.lt.s32.totalorder %s3799_s26, %s3799_s26 }
 0x2f3   :  { %3747 = vmatpush3.bf16.msra.mxu1 %v3746_v43 }
 0x2f4   :  { %3748 = vmatprep.subr.bf16.mxu1 %v3875_v24  ;;  %p3806_p11 = por %p3805_p10, %p3804_p9 }
 0x2f6   :  { %p3807_p12 = pnand %p3806_p11, %p3800_p8 }
 0x2f7   :  { %3750 = vmatpush3.bf16.msra.mxu1 %v3749_v59 }
 0x2f8   :  { %3751 = vmatprep.subr.bf16.mxu1 %v3875_v24 }
 0x2fb   :  { %3753 = vmatpush3.bf16.msra.mxu1 %v3752_v62 }
 0x2fc   :  { %3754 = vmatprep.subr.bf16.mxu1 %v3875_v24 }
 0x2ff   :  { %3756 = vmatpush3.bf16.msra.mxu1 %v3755_v3 }
 0x300   :  { %3757 = vmatprep.subr.bf16.mxu1 %v3875_v24 }
 0x303   :  { %v2045_v12 = vpop.f32.mrb[16].mxu0  ;;  %3759 = vmatpush3.bf16.msra.mxu1 %v3758_v7 }
 0x304   :  { %v2053_v14 = vmul.f32 %v2052_v8, %v2045_v12  ;;  %v3234_v47 = vpop.f32.mrb[17].mxu0  ;;  %3760 = vmatprep.subr.bf16.mxu1 %v3875_v24 }
 0x306   :  { %v2058_v16 = vadd.f32 %v2057_v11, %v2053_v14 }
 0x307   :  { %3762 = vmatpush3.bf16.msra.mxu1 %v3761_v13 }
 0x308   :  { %v2059_v18 = vmax.f32 %v2058_v16, 0.0  ;;  %3763 = vmatprep.subr.bf16.mxu1 %v3875_v24 }
 0x30a   :  { %2061 = vst [vmem:[#allocation5 + $0x30] sm:$0xff] %v2059_v18  ;;  %v2066_v19 = vmul.f32 %v2065_v17, %v2059_v18 }
 0x30b   :  { %3765 = vmatpush3.bf16.msra.mxu1 %v3764_v29 }
 0x30c   :  { %v2071_v20 = vadd.f32 %v2070_v61, %v2066_v19 }
 0x30e   :  { %2073 = vst [vmem:[#allocation6 + $0x30] sm:$0xff] %v2071_v20  ;;  %3268 = vmatmul.mubr.f32.vlgmr.msra.gmra.mrb[16].mxu1 %v2071_v20 }
 0x321   :  { %v873_v21 = vpop.f32.mrb[4].mxu1 }
 0x322   :  { %877 = vst [vmem:[#allocation8] sm:$0xff] %v873_v21  ;;  %v2849_v0 = vpop.f32.mrb[5].mxu1 }
 0x341   :  { %v1086_v22 = vpop.f32.mrb[6].mxu1 }
 0x342   :  { %1091 = vst [vmem:[#allocation8 + $0x8] sm:$0xff] %v1086_v22  ;;  %v2919_v23 = vpop.f32.mrb[7].mxu1 }
 0x361   :  { %v1299_v36 = vpop.f32.mrb[8].mxu1 }
 0x362   :  { %1304 = vst [vmem:[#allocation8 + $0x10] sm:$0xff] %v1299_v36  ;;  %v2989_v32 = vpop.f32.mrb[9].mxu1 }
 0x363   :  { %3810 = shalt.err (!%p3807_p12)
}
 0x364   :  { %s3811_s28 = scalar_lea.hbm %s5390_s6, 896 }
 0x365   :  { %p3812_p13 = scmp.ne.s32.totalorder %s5390_s6, %s3811_s28  ;;  %p3815_p0 = scmp.lt.u32.totalorder %s3811_s28, %s5390_s6 }
 0x367   :  { %p3817_p1 = pnand %p3815_p0, %p3812_p13 }
 0x369   :  { %3820 = shalt.err (!%p3817_p1)
}
 0x36a   :  { %s3879_s9 = smov 128   ;;  %s3880_s10 = smov 8  }
 0x36b   :  { %2186 = dma.vmem_to_hbm [thread:$0]  %s2181_s23, 896, %s5390_s6, [#allocation7], %s3879_s9, %s3879_s9, %s3880_s10  }
 0x36c   :  { %s3821_s13 = scalar_lea.vmem %s5332_s25, 896  ;;  %p3826_p3 = scmp.lt.s32.totalorder %s5332_s25, %s5332_s25 }
 0x36d   :  { %p3822_p2 = scmp.ne.s32.totalorder %s5332_s25, %s3821_s13  ;;  %p3827_p4 = scmp.lt.s32.totalorder %s3821_s13, %s3821_s13 }
 0x36f   :  { %p3828_p5 = por %p3827_p4, %p3826_p3 }
 0x371   :  { %p3829_p6 = pnand %p3828_p5, %p3822_p2 }
 0x373   :  { %3832 = shalt.err (!%p3829_p6)
}
 0x374   :  { %s3833_s16 = scalar_lea.hbm %s5389_s5, 896 }
 0x375   :  { %p3834_p7 = scmp.ne.s32.totalorder %s5389_s5, %s3833_s16  ;;  %p3837_p8 = scmp.lt.u32.totalorder %s3833_s16, %s5389_s5 }
 0x377   :  { %p3839_p9 = pnand %p3837_p8, %p3834_p7 }
 0x379   :  { %3842 = shalt.err (!%p3839_p9)
}
 0x37a   :  { %2174 = dma.vmem_to_hbm [thread:$0]  %s5332_s25, 896, %s5389_s5, [#allocation4], %s3879_s9, %s3879_s9, %s3880_s10  }
 0x37b   :  { %s3881_s2 = smov [#allocation8]  }
 0x37c   :  { %s2192_s21 = sshll.u32 %s3881_s2, 4  ;;  %s2193_s21 = int_to_ptr.vmem [resolvable:$true] %s2192_s21 }
 0x37d   :  { %s3843_s22 = scalar_lea.vmem %s2193_s21, 896  ;;  %p3848_p11 = scmp.lt.s32.totalorder %s2193_s21, %s2193_s21 }
 0x37e   :  { %p3844_p10 = scmp.ne.s32.totalorder %s2193_s21, %s3843_s22  ;;  %p3849_p12 = scmp.lt.s32.totalorder %s3843_s22, %s3843_s22 }
 0x380   :  { %p3850_p13 = por %p3849_p12, %p3848_p11 }
 0x381   :  { %v1512_v24 = vpop.f32.mrb[10].mxu1 }
 0x382   :  { %1517 = vst [vmem:[#allocation8 + $0x18] sm:$0xff] %v1512_v24  ;;  %v3059_v40 = vpop.f32.mrb[11].mxu1  ;;  %p3851_p0 = pnand %p3850_p13, %p3844_p10 }
 0x3a1   :  { %v1727_v25 = vpop.f32.mrb[12].mxu1 }
 0x3a2   :  { %1732 = vst [vmem:[#allocation8 + $0x20] sm:$0xff] %v1727_v25  ;;  %v3129_v63 = vpop.f32.mrb[13].mxu1 }
 0x3c1   :  { %v1942_v28 = vpop.f32.mrb[14].mxu1 }
 0x3c2   :  { %1947 = vst [vmem:[#allocation8 + $0x28] sm:$0xff] %v1942_v28  ;;  %v3199_v30 = vpop.f32.mrb[15].mxu1 }
 0x3e1   :  { %v2157_v35 = vpop.f32.mrb[16].mxu1 }
 0x3e2   :  { %2162 = vst [vmem:[#allocation8 + $0x30] sm:$0xff] %v2157_v35  ;;  %v3269_v37 = vpop.f32.mrb[17].mxu1 }
 0x3e3   :  { %3854 = shalt.err (!%p3851_p0)
}
 0x3e4   :  { %s3855_s23 = scalar_lea.hbm %s5391_s7, 896 }
 0x3e5   :  { %p3856_p1 = scmp.ne.s32.totalorder %s5391_s7, %s3855_s23  ;;  %p3859_p2 = scmp.lt.u32.totalorder %s3855_s23, %s5391_s7 }
 0x3e7   :  { %p3861_p3 = pnand %p3859_p2, %p3856_p1 }
 0x3e9   :  { %3864 = shalt.err (!%p3861_p3)
}
 0x3ea   :  { %2198 = dma.vmem_to_hbm [thread:$0]  %s2193_s21, 896, %s5391_s7, [#allocation7], %s3879_s9, %s3879_s9, %s3880_s10  }
 0x3eb   :  { %3867 = dma.done.wait [#allocation4], 896  }
 0x3ec   :  { %3868 = vsyncadd [#allocation4], 4294966400 }
 0x3ed   :  { %3869 = dma.done.wait [#allocation7], 1792  }
 0x3ee   :  { %3870 = vsyncadd [#allocation7], 4294965504 }
 0x3ef   :  { %2208 = vsyncpa [#allocation3], 1 }
 0x3f0   :  { %2209 = vsyncpa [#allocation4], 1 }
 0x3f1   :  { %2210 = vsyncpa [#allocation7], 1 }

</bundles_post_ra>
